<compile_context>
chip_gen: v5e
topology: v5e:2x2
jax: 0.10.0
libtpu: 0.0.40
codegen_flags: <defaults>
</compile_context>

<pallas_src>
import functools
import math

import jax
import jax.numpy as jnp
from jax.experimental import pallas as pl
from jax.experimental.pallas import tpu as pltpu


def _round_up(x, m):
    return ((x + m - 1) // m) * m


# ---------------------------------------------------------------------------
# Pallas kernel: one (n_tile, m_tile) grid step.
# ---------------------------------------------------------------------------
def _quant_linear_kernel(x_ref, qw_ref, sc_ref, zp_ref, b_ref, o_ref, w_ref,
                         *, group_size, half_groups):
    """
    x_ref : (tile_m, Kp)        bf16   activations (contiguous K)
    qw_ref: (tile_n, Kp // 2)   uint8  packed weights: low nibble -> k in [0, Kp/2),
                                       high nibble -> k in [Kp/2, Kp)
    sc_ref: (tile_n, n_groups)  f32    per-group scales
    zp_ref: (tile_n, n_groups)  f32    per-group zero points
    b_ref : (1, tile_n)         f32    bias (zeros when absent)
    o_ref : (tile_m, tile_n)           output tile
    w_ref : (tile_n, Kp)        bf16   VMEM scratch: dequantized weight tile
    """
    m = pl.program_id(1)
    kh = half_groups * group_size            # Kp // 2

    # Dequantize the resident weight tile ONCE per N tile; reuse across all M steps.
    @pl.when(m == 0)
    def _dequantize():
        q = qw_ref[...].astype(jnp.int32)                  # (tile_n, Kh)
        lo = (q & 15).astype(jnp.float32)                  # weight cols [0, Kh)
        hi = ((q >> 4) & 15).astype(jnp.float32)           # weight cols [Kh, Kp)
        # Static unroll over groups (per-group scale/zp broadcast happens here, in-kernel).
        # TODO(synk): switch to pl.loop + dynamic slices if the group count gets very large.
        for g in range(half_groups):
            lo_g = lo[:, g * group_size:(g + 1) * group_size]
            hi_g = hi[:, g * group_size:(g + 1) * group_size]
            sc_l = sc_ref[:, pl.ds(g, 1)]                  # (tile_n, 1)
            zp_l = zp_ref[:, pl.ds(g, 1)]
            sc_h = sc_ref[:, pl.ds(g + half_groups, 1)]
            zp_h = zp_ref[:, pl.ds(g + half_groups, 1)]
            w_ref[:, pl.ds(g * group_size, group_size)] = (
                (lo_g - zp_l) * sc_l).astype(jnp.bfloat16)
            w_ref[:, pl.ds(kh + g * group_size, group_size)] = (
                (hi_g - zp_h) * sc_h).astype(jnp.bfloat16)

    # (tile_m, Kp) x (tile_n, Kp) -> (tile_m, tile_n): contract the last axes of both
    # operands (weights consumed in stored layout, no transpose), f32 accumulation on MXU.
    acc = jax.lax.dot_general(
        x_ref[...], w_ref[...],
        dimension_numbers=(((1,), (1,)), ((), ())),
        preferred_element_type=jnp.float32)
    acc = acc + b_ref[...]                                  # fused bias epilogue
    o_ref[...] = acc.astype(o_ref.dtype)


# ---------------------------------------------------------------------------
# Wrapper: packing-format plumbing + pallas_call.
# ---------------------------------------------------------------------------
def quant_linear_4bit(x, qweight, scales, qzeros, *, group_size, in_features,
                      out_features, bias=None, tile_m=256, tile_n=256):
    """MatMulNBits forward: x (..., K) -> (..., N) with 4-bit packed weights.

    qweight: uint8 (N, k_blocks, group_size // 2)  (ORT MatMulNBits packing)
    scales : float (N * k_blocks,)
    qzeros : uint8 (N * ceil(k_blocks / 2),)
    """
    # TODO(synk): g_idx (act-order) path not implemented; the module's own g_idx is the
    # trivial i // group_size ordering, which is equivalent to no g_idx.
    N, K, gs = out_features, in_features, group_size
    hg = gs // 2
    kb = math.ceil(K / gs)                      # n_blocks_per_col in the module

    # ---- static-weight plumbing (format conversion only; weights are static) ----
    # Unpack ORT bytes (low nibble = element 2j, high = 2j+1) into natural K order.
    qb = qweight.reshape(N, kb * hg).astype(jnp.int32)
    w_nat = jnp.stack([qb & 15, (qb >> 4) & 15], axis=-1).reshape(N, kb * gs)

    # Per-group scales / zero points in (N, kb) layout.
    sc = scales.reshape(N, kb).astype(jnp.float32)
    zb = (kb + 1) // 2
    qz = qzeros.reshape(N, zb).astype(jnp.int32)
    zp = jnp.stack([qz & 15, (qz >> 4) & 15], axis=-1).reshape(N, 2 * zb)[:, :kb]
    zp = zp.astype(jnp.float32)

    # Pad to an even group count so each nibble plane covers whole groups.
    kbp = kb + (kb % 2)
    Kp = kbp * gs
    Kh = Kp // 2
    half_groups = kbp // 2
    if w_nat.shape[1] < Kp:
        w_nat = jnp.pad(w_nat, ((0, 0), (0, Kp - w_nat.shape[1])))
    if kbp > kb:
        sc = jnp.pad(sc, ((0, 0), (0, kbp - kb)))
        zp = jnp.pad(zp, ((0, 0), (0, kbp - kb)))

    # Re-pack: low nibble plane = K cols [0, Kh), high nibble plane = [Kh, Kp).
    qw2 = (w_nat[:, :Kh] | (w_nat[:, Kh:] << 4)).astype(jnp.uint8)      # (N, Kh) uint8

    # ---- activations, tiles, padding ----
    lead = x.shape[:-1]
    out_dtype = x.dtype
    xm = x.reshape(-1, K).astype(jnp.bfloat16)      # bf16 MXU operands
    M = xm.shape[0]

    tm = _round_up(min(tile_m, _round_up(M, 8)), 8)
    tn = _round_up(min(tile_n, N), 128)             # lane-dense output tiles
    Mp = _round_up(M, tm)
    Np = _round_up(N, tn)

    xm = jnp.pad(xm, ((0, Mp - M), (0, Kp - K)))    # padded cols are zero -> no contribution
    if Np > N:
        qw2 = jnp.pad(qw2, ((0, Np - N), (0, 0)))
        sc = jnp.pad(sc, ((0, Np - N), (0, 0)))
        zp = jnp.pad(zp, ((0, Np - N), (0, 0)))
    if bias is None:
        b = jnp.zeros((1, Np), jnp.float32)
    else:
        b = jnp.pad(bias.astype(jnp.float32).reshape(1, N), ((0, 0), (0, Np - N)))

    grid = (Np // tn, Mp // tm)                     # N tiles outer (parallel), M inner

    # Crude VMEM budget: double-buffered I/O blocks + the dequantized-weight scratch.
    vmem_need = (2 * tm * Kp * 2            # x blocks (bf16)
                 + 2 * tn * Kh              # packed weight blocks (uint8)
                 + 2 * 2 * tn * kbp * 4     # scales + zero points (f32)
                 + 2 * tn * 4               # bias
                 + 2 * tm * tn * 4          # output blocks
                 + tn * Kp * 2)             # dequantized weight scratch (bf16)
    vmem_limit = int(max(32 * 1024 * 1024, 1.5 * vmem_need))

    kernel = functools.partial(_quant_linear_kernel, group_size=gs,
                               half_groups=half_groups)

    out = pl.pallas_call(
        kernel,
        out_shape=jax.ShapeDtypeStruct((Mp, Np), out_dtype),
        grid_spec=pltpu.PrefetchScalarGridSpec(
            num_scalar_prefetch=0,
            grid=grid,
            in_specs=[
                pl.BlockSpec((tm, Kp), lambda n, m: (m, 0)),    # x (contiguous K)
                pl.BlockSpec((tn, Kh), lambda n, m: (n, 0)),    # packed weights (uint8)
                pl.BlockSpec((tn, kbp), lambda n, m: (n, 0)),   # per-group scales
                pl.BlockSpec((tn, kbp), lambda n, m: (n, 0)),   # per-group zero points
                pl.BlockSpec((1, tn), lambda n, m: (0, n)),     # bias
            ],
            out_specs=pl.BlockSpec((tm, tn), lambda n, m: (m, n)),
            scratch_shapes=[pltpu.VMEM((tn, Kp), jnp.bfloat16)],
        ),
        compiler_params=pltpu.CompilerParams(
            dimension_semantics=("parallel", "arbitrary"),
            vmem_limit_bytes=vmem_limit),
    )(xm, qw2, sc, zp, b)

    return out[:M, :N].reshape(*lead, N)


# ---------------------------------------------------------------------------
# ORT-style packing (mirrors QuantLinear4bit.pack) -- pure JAX, deterministic.
# ---------------------------------------------------------------------------
def pack_4bit(iweight, izeros, scales, group_size):
    n, k = iweight.shape
    blob = group_size // 2
    k_blocks = (k + group_size - 1) // group_size
    pad = k_blocks * group_size - k
    if pad > 0:
        iweight = jnp.pad(iweight, ((0, 0), (0, pad)))
    packed_w = (iweight[:, 0::2] & 15) | ((iweight[:, 1::2] & 15) << 4)
    qweight = packed_w.reshape(n, k_blocks, blob).astype(jnp.uint8)
    if izeros.shape[-1] % 2 == 1:
        izeros = jnp.pad(izeros, ((0, 0), (0, 1)))
    packed_z = (izeros[:, 0::2] & 15) | ((izeros[:, 1::2] & 15) << 4)
    qzeros = packed_z.reshape(-1).astype(jnp.uint8)
    return qweight, qzeros, scales.reshape(-1)


def reference_forward(x, iweight, izeros, scales, group_size, bias=None):
    """Pure-JAX reference (bf16 operands, f32 accumulation, matching the kernel)."""
    N, K = iweight.shape
    kb = K // group_size
    w = iweight.astype(jnp.float32).reshape(N, kb, group_size)
    z = izeros[:, :kb].astype(jnp.float32)[:, :, None]
    s = scales.reshape(N, kb).astype(jnp.float32)[:, :, None]
    w_dq = ((w - z) * s).reshape(N, K).astype(jnp.bfloat16).astype(jnp.float32)
    xq = x.astype(jnp.bfloat16).astype(jnp.float32)
    y = jnp.einsum("...k,nk->...n", xq, w_dq)
    if bias is not None:
        y = y + bias
    return y


if __name__ == "__main__":
    # module config (small, TPU-friendly demo shapes)
    group_size = 32
    in_features = 256     # K
    out_features = 256    # N
    batch, seq = 2, 16    # x: (2, 16, 256) -> M = 32

    key = jax.random.PRNGKey(0)
    k1, k2, k3, k4, k5 = jax.random.split(key, 5)

    kb = in_features // group_size
    iweight = jax.random.randint(k1, (out_features, in_features), 0, 16, dtype=jnp.int32)
    izeros = jax.random.randint(k2, (out_features, kb), 0, 16, dtype=jnp.int32)
    scales = jax.random.uniform(k3, (out_features, kb), dtype=jnp.float32) * 0.1 + 0.01
    x = jax.random.normal(k4, (batch, seq, in_features), dtype=jnp.float32)
    bias = jax.random.normal(k5, (out_features,), dtype=jnp.float32) * 0.1

    qweight, qzeros, scales_flat = pack_4bit(iweight, izeros, scales, group_size)

    # Small tiles here only to exercise the multi-tile (2 x 2 grid) path at demo shapes;
    # production defaults are tile_m=256, tile_n=256.
    out = quant_linear_4bit(
        x, qweight, scales_flat, qzeros,
        group_size=group_size, in_features=in_features, out_features=out_features,
        bias=bias, tile_m=16, tile_n=128)
    out = jax.block_until_ready(out)

    ref = reference_forward(x, iweight, izeros, scales, group_size, bias=bias)
    assert out.shape == (batch, seq, out_features)
    max_err = float(jnp.max(jnp.abs(out - ref)))
    assert jnp.allclose(out, ref, atol=2e-2, rtol=2e-2), max_err

    print("KERNEL_OK")
</pallas_src>

<mosaic_0001>
module attributes {stable_mosaic.version = 11 : i64} {
  func.func @_quant_linear_kernel(%arg0: i32, %arg1: i32, %arg2: memref<16x256xbf16, #tpu.memory_space<vmem>>, %arg3: memref<128x128xi8, #tpu.memory_space<vmem>>, %arg4: memref<128x8xf32, #tpu.memory_space<vmem>>, %arg5: memref<128x8xf32, #tpu.memory_space<vmem>>, %arg6: memref<1x128xf32, #tpu.memory_space<vmem>>, %arg7: memref<16x128xf32, #tpu.memory_space<vmem>>, %arg8: memref<128x256xbf16, #tpu.memory_space<vmem>>) attributes {dimension_semantics = [#tpu.dimension_semantics<parallel>, #tpu.dimension_semantics<arbitrary>], iteration_bounds = array<i64: 2, 2>, scalar_prefetch = 0 : i64, scratch_operands = 1 : i64, tpu.core_type = #tpu.core_type<tc>, window_params = [{transform_indices = @transform_0, window_bounds = array<i64: 16, 256>}, {transform_indices = @transform_1, window_bounds = array<i64: 128, 128>}, {transform_indices = @transform_2, window_bounds = array<i64: 128, 8>}, {transform_indices = @transform_3, window_bounds = array<i64: 128, 8>}, {transform_indices = @transform_4, window_bounds = array<i64: 1, 128>}, {transform_indices = @transform_5, window_bounds = array<i64: 16, 128>}]} {
    %c0_i32 = arith.constant 0 : i32
    %0 = arith.cmpi eq, %arg1, %c0_i32 : i32
    %1 = arith.extui %0 : i1 to i32
    %c0_i32_0 = arith.constant 0 : i32
    %2 = arith.cmpi ne, %1, %c0_i32_0 : i32
    scf.if %2 {
      %c0_8 = arith.constant 0 : index
      %c0_9 = arith.constant 0 : index
      %10 = vector.load %arg3[%c0_8, %c0_9] : memref<128x128xi8, #tpu.memory_space<vmem>>, vector<128x128xi8>
      %11 = arith.extui %10 : vector<128x128xi8> to vector<128x128xi32>
      %c15_i32 = arith.constant 15 : i32
      %12 = vector.broadcast %c15_i32 : i32 to vector<128x128xi32>
      %13 = arith.andi %11, %12 : vector<128x128xi32>
      %14 = arith.sitofp %13 : vector<128x128xi32> to vector<128x128xf32>
      %c4_i32 = arith.constant 4 : i32
      %15 = vector.broadcast %c4_i32 : i32 to vector<128x128xi32>
      %16 = arith.shrsi %11, %15 : vector<128x128xi32>
      %c15_i32_10 = arith.constant 15 : i32
      %17 = vector.broadcast %c15_i32_10 : i32 to vector<128x128xi32>
      %18 = arith.andi %16, %17 : vector<128x128xi32>
      %19 = arith.sitofp %18 : vector<128x128xi32> to vector<128x128xf32>
      %20 = vector.extract_strided_slice %14 {offsets = [0, 0], sizes = [128, 32], strides = [1, 1]} : vector<128x128xf32> to vector<128x32xf32>
      %21 = vector.extract_strided_slice %19 {offsets = [0, 0], sizes = [128, 32], strides = [1, 1]} : vector<128x128xf32> to vector<128x32xf32>
      %c0_11 = arith.constant 0 : index
      %c0_12 = arith.constant 0 : index
      %22 = vector.load %arg4[%c0_11, %c0_12] : memref<128x8xf32, #tpu.memory_space<vmem>>, vector<128x1xf32>
      %c0_13 = arith.constant 0 : index
      %c0_14 = arith.constant 0 : index
      %23 = vector.load %arg5[%c0_13, %c0_14] : memref<128x8xf32, #tpu.memory_space<vmem>>, vector<128x1xf32>
      %c0_15 = arith.constant 0 : index
      %c4 = arith.constant 4 : index
      %24 = vector.load %arg4[%c0_15, %c4] : memref<128x8xf32, #tpu.memory_space<vmem>>, vector<128x1xf32>
      %c0_16 = arith.constant 0 : index
      %c4_17 = arith.constant 4 : index
      %25 = vector.load %arg5[%c0_16, %c4_17] : memref<128x8xf32, #tpu.memory_space<vmem>>, vector<128x1xf32>
      %26 = vector.broadcast %23 : vector<128x1xf32> to vector<128x32xf32>
      %27 = arith.subf %20, %26 : vector<128x32xf32>
      %28 = vector.broadcast %22 : vector<128x1xf32> to vector<128x32xf32>
      %29 = arith.mulf %27, %28 : vector<128x32xf32>
      %30 = arith.truncf %29 : vector<128x32xf32> to vector<128x32xbf16>
      %c0_18 = arith.constant 0 : index
      %c0_19 = arith.constant 0 : index
      %31 = vector.load %arg8[%c0_18, %c0_19] : memref<128x256xbf16, #tpu.memory_space<vmem>>, vector<128x32xbf16>
      tpu.vector_store %arg8[%c0_18, %c0_19], %30 {strides = array<i32>} : memref<128x256xbf16, #tpu.memory_space<vmem>>, vector<128x32xbf16>,
      %32 = vector.broadcast %25 : vector<128x1xf32> to vector<128x32xf32>
      %33 = arith.subf %21, %32 : vector<128x32xf32>
      %34 = vector.broadcast %24 : vector<128x1xf32> to vector<128x32xf32>
      %35 = arith.mulf %33, %34 : vector<128x32xf32>
      %36 = arith.truncf %35 : vector<128x32xf32> to vector<128x32xbf16>
      %c0_20 = arith.constant 0 : index
      %c128 = arith.constant 128 : index
      %37 = vector.load %arg8[%c0_20, %c128] : memref<128x256xbf16, #tpu.memory_space<vmem>>, vector<128x32xbf16>
      tpu.vector_store %arg8[%c0_20, %c128], %36 {strides = array<i32>} : memref<128x256xbf16, #tpu.memory_space<vmem>>, vector<128x32xbf16>,
      %38 = vector.extract_strided_slice %14 {offsets = [0, 32], sizes = [128, 32], strides = [1, 1]} : vector<128x128xf32> to vector<128x32xf32>
      %39 = vector.extract_strided_slice %19 {offsets = [0, 32], sizes = [128, 32], strides = [1, 1]} : vector<128x128xf32> to vector<128x32xf32>
      %c0_21 = arith.constant 0 : index
      %c1 = arith.constant 1 : index
      %40 = vector.load %arg4[%c0_21, %c1] : memref<128x8xf32, #tpu.memory_space<vmem>>, vector<128x1xf32>
      %c0_22 = arith.constant 0 : index
      %c1_23 = arith.constant 1 : index
      %41 = vector.load %arg5[%c0_22, %c1_23] : memref<128x8xf32, #tpu.memory_space<vmem>>, vector<128x1xf32>
      %c0_24 = arith.constant 0 : index
      %c5 = arith.constant 5 : index
      %42 = vector.load %arg4[%c0_24, %c5] : memref<128x8xf32, #tpu.memory_space<vmem>>, vector<128x1xf32>
      %c0_25 = arith.constant 0 : index
      %c5_26 = arith.constant 5 : index
      %43 = vector.load %arg5[%c0_25, %c5_26] : memref<128x8xf32, #tpu.memory_space<vmem>>, vector<128x1xf32>
      %44 = vector.broadcast %41 : vector<128x1xf32> to vector<128x32xf32>
      %45 = arith.subf %38, %44 : vector<128x32xf32>
      %46 = vector.broadcast %40 : vector<128x1xf32> to vector<128x32xf32>
      %47 = arith.mulf %45, %46 : vector<128x32xf32>
      %48 = arith.truncf %47 : vector<128x32xf32> to vector<128x32xbf16>
      %c0_27 = arith.constant 0 : index
      %c32 = arith.constant 32 : index
      %49 = vector.load %arg8[%c0_27, %c32] : memref<128x256xbf16, #tpu.memory_space<vmem>>, vector<128x32xbf16>
      tpu.vector_store %arg8[%c0_27, %c32], %48 {strides = array<i32>} : memref<128x256xbf16, #tpu.memory_space<vmem>>, vector<128x32xbf16>,
      %50 = vector.broadcast %43 : vector<128x1xf32> to vector<128x32xf32>
      %51 = arith.subf %39, %50 : vector<128x32xf32>
      %52 = vector.broadcast %42 : vector<128x1xf32> to vector<128x32xf32>
      %53 = arith.mulf %51, %52 : vector<128x32xf32>
      %54 = arith.truncf %53 : vector<128x32xf32> to vector<128x32xbf16>
      %c0_28 = arith.constant 0 : index
      %c160 = arith.constant 160 : index
      %55 = vector.load %arg8[%c0_28, %c160] : memref<128x256xbf16, #tpu.memory_space<vmem>>, vector<128x32xbf16>
      tpu.vector_store %arg8[%c0_28, %c160], %54 {strides = array<i32>} : memref<128x256xbf16, #tpu.memory_space<vmem>>, vector<128x32xbf16>,
      %56 = vector.extract_strided_slice %14 {offsets = [0, 64], sizes = [128, 32], strides = [1, 1]} : vector<128x128xf32> to vector<128x32xf32>
      %57 = vector.extract_strided_slice %19 {offsets = [0, 64], sizes = [128, 32], strides = [1, 1]} : vector<128x128xf32> to vector<128x32xf32>
      %c0_29 = arith.constant 0 : index
      %c2 = arith.constant 2 : index
      %58 = vector.load %arg4[%c0_29, %c2] : memref<128x8xf32, #tpu.memory_space<vmem>>, vector<128x1xf32>
      %c0_30 = arith.constant 0 : index
      %c2_31 = arith.constant 2 : index
      %59 = vector.load %arg5[%c0_30, %c2_31] : memref<128x8xf32, #tpu.memory_space<vmem>>, vector<128x1xf32>
      %c0_32 = arith.constant 0 : index
      %c6 = arith.constant 6 : index
      %60 = vector.load %arg4[%c0_32, %c6] : memref<128x8xf32, #tpu.memory_space<vmem>>, vector<128x1xf32>
      %c0_33 = arith.constant 0 : index
      %c6_34 = arith.constant 6 : index
      %61 = vector.load %arg5[%c0_33, %c6_34] : memref<128x8xf32, #tpu.memory_space<vmem>>, vector<128x1xf32>
      %62 = vector.broadcast %59 : vector<128x1xf32> to vector<128x32xf32>
      %63 = arith.subf %56, %62 : vector<128x32xf32>
      %64 = vector.broadcast %58 : vector<128x1xf32> to vector<128x32xf32>
      %65 = arith.mulf %63, %64 : vector<128x32xf32>
      %66 = arith.truncf %65 : vector<128x32xf32> to vector<128x32xbf16>
      %c0_35 = arith.constant 0 : index
      %c64 = arith.constant 64 : index
      %67 = vector.load %arg8[%c0_35, %c64] : memref<128x256xbf16, #tpu.memory_space<vmem>>, vector<128x32xbf16>
      tpu.vector_store %arg8[%c0_35, %c64], %66 {strides = array<i32>} : memref<128x256xbf16, #tpu.memory_space<vmem>>, vector<128x32xbf16>,
      %68 = vector.broadcast %61 : vector<128x1xf32> to vector<128x32xf32>
      %69 = arith.subf %57, %68 : vector<128x32xf32>
      %70 = vector.broadcast %60 : vector<128x1xf32> to vector<128x32xf32>
      %71 = arith.mulf %69, %70 : vector<128x32xf32>
      %72 = arith.truncf %71 : vector<128x32xf32> to vector<128x32xbf16>
      %c0_36 = arith.constant 0 : index
      %c192 = arith.constant 192 : index
      %73 = vector.load %arg8[%c0_36, %c192] : memref<128x256xbf16, #tpu.memory_space<vmem>>, vector<128x32xbf16>
      tpu.vector_store %arg8[%c0_36, %c192], %72 {strides = array<i32>} : memref<128x256xbf16, #tpu.memory_space<vmem>>, vector<128x32xbf16>,
      %74 = vector.extract_strided_slice %14 {offsets = [0, 96], sizes = [128, 32], strides = [1, 1]} : vector<128x128xf32> to vector<128x32xf32>
      %75 = vector.extract_strided_slice %19 {offsets = [0, 96], sizes = [128, 32], strides = [1, 1]} : vector<128x128xf32> to vector<128x32xf32>
      %c0_37 = arith.constant 0 : index
      %c3 = arith.constant 3 : index
      %76 = vector.load %arg4[%c0_37, %c3] : memref<128x8xf32, #tpu.memory_space<vmem>>, vector<128x1xf32>
      %c0_38 = arith.constant 0 : index
      %c3_39 = arith.constant 3 : index
      %77 = vector.load %arg5[%c0_38, %c3_39] : memref<128x8xf32, #tpu.memory_space<vmem>>, vector<128x1xf32>
      %c0_40 = arith.constant 0 : index
      %c7 = arith.constant 7 : index
      %78 = vector.load %arg4[%c0_40, %c7] : memref<128x8xf32, #tpu.memory_space<vmem>>, vector<128x1xf32>
      %c0_41 = arith.constant 0 : index
      %c7_42 = arith.constant 7 : index
      %79 = vector.load %arg5[%c0_41, %c7_42] : memref<128x8xf32, #tpu.memory_space<vmem>>, vector<128x1xf32>
      %80 = vector.broadcast %77 : vector<128x1xf32> to vector<128x32xf32>
      %81 = arith.subf %74, %80 : vector<128x32xf32>
      %82 = vector.broadcast %76 : vector<128x1xf32> to vector<128x32xf32>
      %83 = arith.mulf %81, %82 : vector<128x32xf32>
      %84 = arith.truncf %83 : vector<128x32xf32> to vector<128x32xbf16>
      %c0_43 = arith.constant 0 : index
      %c96 = arith.constant 96 : index
      %85 = vector.load %arg8[%c0_43, %c96] : memref<128x256xbf16, #tpu.memory_space<vmem>>, vector<128x32xbf16>
      tpu.vector_store %arg8[%c0_43, %c96], %84 {strides = array<i32>} : memref<128x256xbf16, #tpu.memory_space<vmem>>, vector<128x32xbf16>,
      %86 = vector.broadcast %79 : vector<128x1xf32> to vector<128x32xf32>
      %87 = arith.subf %75, %86 : vector<128x32xf32>
      %88 = vector.broadcast %78 : vector<128x1xf32> to vector<128x32xf32>
      %89 = arith.mulf %87, %88 : vector<128x32xf32>
      %90 = arith.truncf %89 : vector<128x32xf32> to vector<128x32xbf16>
      %c0_44 = arith.constant 0 : index
      %c224 = arith.constant 224 : index
      %91 = vector.load %arg8[%c0_44, %c224] : memref<128x256xbf16, #tpu.memory_space<vmem>>, vector<128x32xbf16>
      tpu.vector_store %arg8[%c0_44, %c224], %90 {strides = array<i32>} : memref<128x256xbf16, #tpu.memory_space<vmem>>, vector<128x32xbf16>,
    } else {
    }
    %c0 = arith.constant 0 : index
    %c0_1 = arith.constant 0 : index
    %3 = vector.load %arg2[%c0, %c0_1] : memref<16x256xbf16, #tpu.memory_space<vmem>>, vector<16x256xbf16>
    %c0_2 = arith.constant 0 : index
    %c0_3 = arith.constant 0 : index
    %4 = vector.load %arg8[%c0_2, %c0_3] : memref<128x256xbf16, #tpu.memory_space<vmem>>, vector<128x256xbf16>
    %cst = arith.constant dense<0.000000e+00> : vector<16x128xf32>
    %5 = tpu.matmul %3, %4, %cst {dimension_numbers = #tpu.dot_dimension_numbers<[1], [1], [0], [0], [0, 0, 1, 0], [], []>} : vector<16x256xbf16>, vector<128x256xbf16>, vector<16x128xf32> -> vector<16x128xf32>
    %c0_4 = arith.constant 0 : index
    %c0_5 = arith.constant 0 : index
    %6 = vector.load %arg6[%c0_4, %c0_5] : memref<1x128xf32, #tpu.memory_space<vmem>>, vector<1x128xf32>
    %7 = vector.broadcast %6 : vector<1x128xf32> to vector<16x128xf32>
    %8 = arith.addf %5, %7 : vector<16x128xf32>
    %c0_6 = arith.constant 0 : index
    %c0_7 = arith.constant 0 : index
    %9 = vector.load %arg7[%c0_6, %c0_7] : memref<16x128xf32, #tpu.memory_space<vmem>>, vector<16x128xf32>
    tpu.vector_store %arg7[%c0_6, %c0_7], %8 {strides = array<i32>} : memref<16x128xf32, #tpu.memory_space<vmem>>, vector<16x128xf32>,
    return
  }
  func.func @transform_0(%arg0: i32, %arg1: i32) -> (i32, i32) {
    %c0_i32 = arith.constant 0 : i32
    %c0_i32_0 = arith.constant 0 : i32
    return %arg1, %c0_i32 : i32, i32
  }
  func.func @transform_1(%arg0: i32, %arg1: i32) -> (i32, i32) {
    %c0_i32 = arith.constant 0 : i32
    %c0_i32_0 = arith.constant 0 : i32
    return %arg0, %c0_i32 : i32, i32
  }
  func.func @transform_2(%arg0: i32, %arg1: i32) -> (i32, i32) {
    %c0_i32 = arith.constant 0 : i32
    %c0_i32_0 = arith.constant 0 : i32
    return %arg0, %c0_i32 : i32, i32
  }
  func.func @transform_3(%arg0: i32, %arg1: i32) -> (i32, i32) {
    %c0_i32 = arith.constant 0 : i32
    %c0_i32_0 = arith.constant 0 : i32
    return %arg0, %c0_i32 : i32, i32
  }
  func.func @transform_4(%arg0: i32, %arg1: i32) -> (i32, i32) {
    %c0_i32 = arith.constant 0 : i32
    %c0_i32_0 = arith.constant 0 : i32
    return %c0_i32, %arg0 : i32, i32
  }
  func.func @transform_5(%arg0: i32, %arg1: i32) -> (i32, i32) {
    %c0_i32 = arith.constant 0 : i32
    return %arg1, %arg0 : i32, i32
  }
}

</mosaic_0001>

<bundles_post_ra>
// kernel: tpu_custom_call.1
= control target key start
LH: loop header
LB: loop body
LE: loop exit
PB: predicated region body
PF: predicated region fallthrough
CT: control target
= control target key end

     0   :  { %10 = vsyncpa [#allocation4], 0  ;;  %s4118_s0 = inlined_call_operand.vmem [shape: bf16[32,256], index: 0, kind: input, shape index: {}]   ;;  %s4119_s1 = inlined_call_operand.vmem [shape: u8[256,128], index: 1, kind: input, shape index: {}]   ;;  %s4120_s2 = inlined_call_operand.vmem [shape: f32[256,8], index: 2, kind: input, shape index: {}]   ;;  %s4121_s3 = inlined_call_operand.vmem [shape: f32[256,8], index: 3, kind: input, shape index: {}]   ;;  %s4122_s4 = inlined_call_operand.vmem [shape: f32[1,256], index: 4, kind: input, shape index: {}]   ;;  %s4123_s5 = inlined_call_operand.hbm [shape: f32[32,256], index: 5, kind: output, shape index: {}]  }
   0x1   :  { %12 = vsyncpa [#allocation4 + $0x1], 0  ;;  %s2877_s18 = smov 0   ;;  %s2879_s19 = smov 0  }
   0x2   :  { %s2881_s20 = smov 0   ;;  %s2883_s21 = smov 0  }
   0x3   :  { %s2885_s22 = smov 0   ;;  %s2887_s23 = smov 0  }
   0x4   :  { %s2889_s24 = smov 0   ;;  %s2891_s25 = smov 0  }
   0x5 LB: > { %4207 = sst [smem:[#allocation6_spill]] %s2826_s23  ;;  %s2519_s26 = sadd.s32 4294967295, %s2834_s25   ;;  %s2834_s25 = sphi %s2891_s25, %s18_s25   ;;  %s2830_s24 = sphi %s2889_s24, %s4336_s24   ;;  %s2826_s23 = sphi %s2887_s23, %s4335_s23   ;;  %s2822_s22 = sphi %s2885_s22, %s4334_s22   ;;  %s2818_s21 = sphi %s2883_s21, %s4333_s21   ;;  %s2814_s20 = sphi %s2881_s20, %s4339_s20   ;;  %s2810_s19 = sphi %s2879_s19, %s4338_s19   ;;  %s2806_s18 = sphi %s2877_s18, %s4337_s18  }
   0x6   : > { %4208 = sst [smem:[#allocation7_spill]] %s2830_s24  ;;  %s2520_s27 = sadd.s32 4294967294, %s2834_s25  }
   0x7   : > { %s27_s28 = sadd.s32 1, %s2826_s23  ;;  %s30_s29 = sadd.s32 1, %s2830_s24 }
   0x8   : > { %p28_p0 = scmp.ge.s32.totalorder %s27_s28, 2  ;;  %p179_p1 = scmp.ne.s32.totalorder %s2814_s20, %s2810_s19 }
   0x9   : > { %p180_p2 = scmp.eq.s32.totalorder %s2519_s26, 3  ;;  %p185_p5 = scmp.ne.s32.totalorder %s2810_s19, %s2806_s18 }
   0xa   : > { %s4341_s28 = smov (%p28_p0, %s27_s28), 0  ;;  %s4343_s29 = smov (!%p28_p0, %s30_s29), %s2830_s24 }
   0xb   : > { %4209 = sst [smem:[#allocation8_spill]] %s4341_s28  ;;  %s164_s30 = ssub.s32 %s2826_s23, %s4341_s28 }
   0xc   : > { %p2928_p3 = por %p180_p2, %p179_p1  ;;  %p32_p4 = scmp.ge.s32.totalorder %s4343_s29, 2 }
   0xd   : > { %p186_p6 = scmp.eq.s32.totalorder %s2520_s27, 3  ;;  %p2523_p7 = scmp.ge.s32.totalorder %s2834_s25, 1 }
   0xe   : > { %s4345_s29 = smov (%p32_p4, %s4343_s29), 0  ;;  %p247_p9 = scmp.lt.s32.totalorder %s2834_s25, 5 }
   0xf   : > { %4211 = sst [smem:[#allocation9_spill]] %s4345_s29  ;;  %p2937_p8 = por %p186_p6, %p185_p5 }
  0x10   : > { %s165_s8 = ssub.s32 %s2830_s24, %s4345_s29  ;;  %s169_s9 = sadd.s32 1, %s2814_s20 }
  0x11   : > { %s166_s10 = sor.u32 %s165_s8, %s164_s30  ;;  %p248_p10 = pnand %p2523_p7, %p247_p9 }
  0x12   : > { %p167_p11 = scmp.eq.s32.totalorder %s166_s10, 0  ;;  %s4124_s12 = sand.u32 (!%p248_p10), 1, %s2810_s19  }
  0x13   : > { %251 = sbr.rel (%p248_p10) target bundleno = 1081 (0x439), region = 40  ;;  %s2525_s13 = sshll.u32 (!%p248_p10), %s2818_s21, 1 }
  0x14   : > { %s2946_s11 = scalar_select %p167_p11, %s2814_s20, %s169_s9  }
  0x15   : > { %s2524_s14 = sshll.u32 (!%p248_p10), %s4124_s12, 4  ;;  %p295_p12 = scmp.lt.s32.totalorder (!%p248_p10), %s2525_s13, 3 }
  0x16   : > { %4213 = sst [smem:[#allocation10_spill]] %s2946_s11  ;;  %s2528_s15 = sshll.u32 (!%p248_p10), %s2822_s22, 2 }
  0x17   : > { %p302_p13 = scmp.lt.s32.totalorder (!%p248_p10), %s2528_s15, 7  ;;  %s2530_s16 = sshll.u32 (!%p248_p10), %s2822_s22, 4 }
  0x18   : > { %s4347_s13 = smov (!%p295_p12, %s2525_s13), 3  ;;  %p308_p0 = scmp.lt.s32.totalorder %s2530_s16, 31 }
  0x19   : > { %s2613_s17 = sshll.u32 %s4347_s13, 3  ;;  %p319_p1 = scmp.lt.s32.totalorder %s2822_s22, 1 }
  0x1a   : > { %s2957_s30 = scalar_lea.vmem %s4118_s0, %s2613_s17  ;;  %s4349_s15 = smov (!%p302_p13, %s2528_s15), 7 }
  0x1b   : > { %s4351_s16 = smov (!%p308_p0, %s2530_s16), 31  ;;  %s2529_s8 = sshll.u32 %s4349_s15, 3 }
  0x1c   : > { %s2963_s12 = scalar_lea.vmem %s4119_s1, %s2529_s8  ;;  %s2531_s29 = sshll.u32 %s4351_s16, 3 }
  0x1d   : > { %s2968_s13 = scalar_lea.vmem %s4120_s2, %s2531_s29  ;;  %s2973_s17 = scalar_lea.vmem %s4121_s3, %s2531_s29 }
  0x1e   : > { %s2976_s26 = scalar_select %p319_p1, %s2822_s22, 1 }
  0x1f   : > { %s2982_s8 = scalar_lea.vmem [#allocation3], %s2524_s14  ;;  %p2534_p2 = scmp.ne.s32.totalorder %s2818_s21, 0 }
  0x20   : > { %s321_s9 = scalar_lea.vmem %s4122_s4, %s2976_s26 }
  0x21   : > { %326 = sbr.rel (%p2534_p2) target bundleno = 868 (0x364), region = 44 }
  0x26   : > { %v2986_v0 = vld [vmem:[%s2973_s17 + $0x20] sm:$0xff]  ;;  %v2989_v1 = vld [vmem:[%s2973_s17 + $0x10] sm:$0xff]  ;;  %v2836_v3 = vmov 0   ;;  %v2998_v4 = vld [vmem:[%s2973_s17 + $0x28] sm:$0xff]  ;;  %v2837_v33 = vmov 4   ;;  %vm683_vm0 = vcmask 257024  }
  0x27   : > { %v2992_v2 = vld [vmem:[%s2973_s17] sm:$0xff]  ;;  %2717 = vset.pattern.permute.xlu2 %v2836_v3  ;;  %2716 = vset.pattern.permute.xlu1 %v2836_v3  ;;  %v3001_v5 = vld [vmem:[%s2973_s17 + $0x18] sm:$0xff]  ;;  %v3004_v6 = vld [vmem:[%s2973_s17 + $0x8] sm:$0xff]  ;;  %vm1132_vm1 = vcmask 519424   ;;  %vm1581_vm2 = vcmask 781824   ;;  %vm2030_vm3 = vcmask 1044224  }
  0x28   : > { %2715 = vset.pattern.permute.xlu0 %v2836_v3  ;;  %497 = vperm.xlu2 %2717, %v2986_v0   ;;  %v3010_v7 = vld [vmem:[%s2973_s17 + $0x40] sm:$0xff]  ;;  %v3013_v8 = vld [vmem:[%s2973_s17 + $0x38] sm:$0xff]  ;;  %v3016_v9 = vld [vmem:[%s2973_s17 + $0x30] sm:$0xff] }
  0x29   : > { %487 = vperm.xlu1 %2716, %v2989_v1   ;;  %477 = vperm.xlu0 %2715, %v2992_v2   ;;  %v3022_v10 = vld [vmem:[%s2973_s17 + $0x58] sm:$0xff]  ;;  %v3025_v11 = vld [vmem:[%s2973_s17 + $0x50] sm:$0xff]  ;;  %v3028_v12 = vld [vmem:[%s2973_s17 + $0x48] sm:$0xff] }
  0x2a   : > { %v3034_v13 = vld [vmem:[%s2973_s17 + $0x70] sm:$0xff]  ;;  %v3037_v14 = vld [vmem:[%s2973_s17 + $0x68] sm:$0xff]  ;;  %v3040_v15 = vld [vmem:[%s2973_s17 + $0x60] sm:$0xff] }
  0x2b   : > { %v3046_v16 = vld [vmem:[%s2968_s13 + $0x8] sm:$0xff]  ;;  %v3049_v17 = vld [vmem:[%s2973_s17 + $0x78] sm:$0xff]  ;;  %v3052_v18 = vld [vmem:[%s2968_s13] sm:$0xff] }
  0x2c   : > { %v3058_v19 = vld [vmem:[%s2968_s13 + $0x20] sm:$0xff]  ;;  %v3061_v20 = vld [vmem:[%s2968_s13 + $0x10] sm:$0xff]  ;;  %v3064_v21 = vld [vmem:[%s2968_s13 + $0x18] sm:$0xff] }
  0x2d   : > { %4214 = vst [vmem:[#allocation11_spill] sm:$0xff] %v3058_v19  ;;  %v3070_v22 = vld [vmem:[%s2968_s13 + $0x38] sm:$0xff]  ;;  %v3073_v23 = vld [vmem:[%s2968_s13 + $0x28] sm:$0xff]  ;;  %v3076_v24 = vld [vmem:[%s2968_s13 + $0x30] sm:$0xff] }
  0x2e   : > { %4215 = vst [vmem:[#allocation12_spill] sm:$0xff] %v3064_v21  ;;  %v3082_v25 = vld [vmem:[%s2968_s13 + $0x50] sm:$0xff]  ;;  %v3085_v26 = vld [vmem:[%s2968_s13 + $0x40] sm:$0xff]  ;;  %v3088_v27 = vld [vmem:[%s2968_s13 + $0x48] sm:$0xff] }
  0x2f   : > { %4216 = vst [vmem:[#allocation13_spill] sm:$0xff] %v3070_v22  ;;  %v3094_v28 = vld [vmem:[%s2968_s13 + $0x68] sm:$0xff]  ;;  %v3097_v29 = vld [vmem:[%s2968_s13 + $0x58] sm:$0xff]  ;;  %v3100_v30 = vld [vmem:[%s2968_s13 + $0x60] sm:$0xff] }
  0x30   : > { %502 = vperm.xlu2 %2717, %v2998_v4   ;;  %4217 = vst [vmem:[#allocation14_spill] sm:$0xff] %v3076_v24  ;;  %v3106_v31 = vld [vmem:[%s2968_s13 + $0x70] sm:$0xff]  ;;  %v3109_v32 = vld [vmem:[%s2968_s13 + $0x78] sm:$0xff]  ;;  %v3128_v37 = vld [vmem:[%s2963_s12] sm:$0xff] }
  0x31   : > { %492 = vperm.xlu1 %2716, %v3001_v5   ;;  %482 = vperm.xlu0 %2715, %v3004_v6   ;;  %4218 = vst [vmem:[#allocation15_spill] sm:$0xff] %v3082_v25  ;;  %v332_v38 = vunpack.c.1.s8 %v3128_v37  ;;  %v3143_v43 = vld [vmem:[%s2963_s12 + $0x8] sm:$0xff]  ;;  %v3172_v61 = vld [vmem:[%s2963_s12 + $0x10] sm:$0xff]  ;;  %v331_v62 = vunpack.c.0.s8 %v3128_v37 }
  0x32   : > { %4219 = vst [vmem:[#allocation16_spill] sm:$0xff] %v3088_v27  ;;  %v335_v45 = vunpack.c.0.s8 %v3143_v43  ;;  %v338_v53 = vunpack.c.3.s8 %v3143_v43 }
  0x33   : > { %4220 = vst [vmem:[#allocation17_spill] sm:$0xff] %v3100_v30  ;;  %v3140_v42 = vand.u32 255, %v332_v38 }
  0x34   : > { %v3156_v50 = vand.u32 255, %v335_v45  ;;  %v3168_v59 = vand.u32 255, %v338_v53 }
  0x35   : > { %v364_v44 = vand.u32 15, %v3140_v42 }
  0x36   : > { %v367_v52 = vand.u32 15, %v3156_v50  ;;  %v370_v3 = vand.u32 15, %v3168_v59 }
  0x37   : > { %v3154_v49 = vcvt.s32.f32 %v364_v44 }
  0x38   : > { %517 = vperm.xlu2 %2717, %v3010_v7   ;;  %v3166_v58 = vcvt.s32.f32 %v367_v52  ;;  %v3185_v52 = vcvt.s32.f32 %v370_v3 }
  0x39   : > { %512 = vperm.xlu1 %2716, %v3013_v8   ;;  %507 = vperm.xlu0 %2715, %v3016_v9   ;;  %4221 = vst [vmem:[#allocation18_spill] sm:$0xff] %v3154_v49 }
  0x3a   : > { %4222 = vst [vmem:[#allocation19_spill] sm:$0xff] %v3166_v58 }
  0x3b   : > { %4224 = vst [vmem:[#allocation21_spill] sm:$0xff] %v3185_v52 }
  0x40   : > { %532 = vperm.xlu2 %2717, %v3022_v10  }
  0x41   : > { %527 = vperm.xlu1 %2716, %v3025_v11   ;;  %522 = vperm.xlu0 %2715, %v3028_v12  }
  0x48   : > { %547 = vperm.xlu2 %2717, %v3034_v13  }
  0x49   : > { %542 = vperm.xlu1 %2716, %v3037_v14   ;;  %537 = vperm.xlu0 %2715, %v3040_v15  }
  0x50   : > { %578 = vperm.xlu2 %2717, %v3046_v16  }
  0x51   : > { %552 = vperm.xlu0 %2715, %v3049_v17   ;;  %573 = vperm.xlu1 %2716, %v3052_v18  }
  0x58   : > { %593 = vperm.xlu2 %2717, %v3058_v19  }
  0x59   : > { %583 = vperm.xlu0 %2715, %v3061_v20   ;;  %588 = vperm.xlu1 %2716, %v3064_v21  }
  0x60   : > { %608 = vperm.xlu2 %2717, %v3070_v22  }
  0x61   : > { %598 = vperm.xlu0 %2715, %v3073_v23   ;;  %603 = vperm.xlu1 %2716, %v3076_v24  }
  0x68   : > { %623 = vperm.xlu2 %2717, %v3082_v25  }
  0x69   : > { %613 = vperm.xlu0 %2715, %v3085_v26   ;;  %618 = vperm.xlu1 %2716, %v3088_v27  }
  0x70   : > { %638 = vperm.xlu2 %2717, %v3094_v28  }
  0x71   : > { %628 = vperm.xlu0 %2715, %v3097_v29   ;;  %633 = vperm.xlu1 %2716, %v3100_v30  }
  0x78   : > { %2718 = vset.pattern.permute.xlu2 %v2837_v33 }
  0x79   : > { %643 = vperm.xlu0 %2715, %v3106_v31   ;;  %648 = vperm.xlu1 %2716, %v3109_v32  }
  0x7a   : > { %701 = vperm.xlu2 %2718, %v2992_v2  }
  0x81   : > { %2719 = vset.pattern.permute.xlu0 %v2837_v33  ;;  %2720 = vset.pattern.permute.xlu1 %v2837_v33  ;;  %v341_v33 = vunpack.c.2.s8 %v3172_v61 }
  0x82   : > { %705 = vperm.xlu0 %2719, %v3004_v6   ;;  %713 = vperm.xlu2 %2718, %v3001_v5   ;;  %v498_v34 = vpop.permute.xlu2 %497 }
  0x83   : > { %709 = vperm.xlu1 %2720, %v2989_v1   ;;  %v559_v63 = vsub.f32 %v3166_v58, %v498_v34  ;;  %v3187_v34 = vand.u32 255, %v341_v33 }
  0x85   : > { %4225 = vst [vmem:[#allocation22_spill] sm:$0xff] %v3187_v34  ;;  %v373_v58 = vand.u32 15, %v3187_v34 }
  0x8a   : > { %725 = vperm.xlu0 %2719, %v3016_v9   ;;  %721 = vperm.xlu2 %2718, %v2998_v4   ;;  %v3119_v35 = vpop.permute.xlu2 %502 }
  0x8b   : > { %717 = vperm.xlu1 %2720, %v2986_v0  }
  0x92   : > { %737 = vperm.xlu0 %2719, %v3028_v12   ;;  %733 = vperm.xlu2 %2718, %v3010_v7   ;;  %v3124_v36 = vpop.permute.xlu2 %517 }
  0x93   : > { %729 = vperm.xlu1 %2720, %v3013_v8  }
  0x9a   : > { %749 = vperm.xlu0 %2719, %v3040_v15   ;;  %745 = vperm.xlu2 %2718, %v3022_v10   ;;  %v3133_v39 = vpop.permute.xlu2 %532 }
  0x9b   : > { %741 = vperm.xlu1 %2720, %v3025_v11   ;;  %v3136_v40 = vpop.permute.xlu1 %487  ;;  %v3138_v41 = vpop.permute.xlu0 %477 }
  0xa2   : > { %761 = vperm.xlu0 %2719, %v3049_v17   ;;  %757 = vperm.xlu2 %2718, %v3034_v13   ;;  %v3149_v46 = vpop.permute.xlu2 %547 }
  0xa3   : > { %753 = vperm.xlu1 %2720, %v3037_v14   ;;  %v3152_v47 = vpop.permute.xlu1 %492  ;;  %v483_v48 = vpop.permute.xlu0 %482 }
  0xa4   : > { %v556_v51 = vsub.f32 %v3154_v49, %v483_v48 }
  0xaa   : > { %789 = vperm.xlu0 %2719, %v3061_v20   ;;  %785 = vperm.xlu2 %2718, %v3046_v16   ;;  %v579_v54 = vpop.permute.xlu2 %578 }
  0xab   : > { %781 = vperm.xlu1 %2720, %v3052_v18   ;;  %v513_v55 = vpop.permute.xlu1 %512  ;;  %v3164_v56 = vpop.permute.xlu0 %507  ;;  %v652_v57 = vmul.f32 %v579_v54, %v556_v51  ;;  %v3183_v51 = vand.u32 255, %v331_v62  ;;  %v333_v62 = vunpack.c.2.s8 %v3128_v37 }
  0xad   : > { %v668_v60 = vpack.c.bf16 %v652_v57, %v652_v57  ;;  %4223 = vst [vmem:[#allocation20_spill] sm:$0xff] %v3183_v51  ;;  %v363_v54 = vand.u32 15, %v3183_v51  ;;  %v3192_v57 = vld [vmem:[%s2963_s12 + $0x18] sm:$0xff]  ;;  %v3210_v34 = vand.u32 255, %v333_v62 }
  0xae   : > { %v344_v49 = vunpack.c.1.s8 %v3192_v57 }
  0xaf   : > { %685 = vst.msk [vmem:[#allocation2 + $0x8] sm:$0xf] %vm683_vm0, %v668_v60  ;;  %v562_v60 = vsub.f32 %v3185_v52, %v513_v55  ;;  %v3204_v55 = vcvt.s32.f32 %v363_v54 }
  0xb0   : > { %v3208_v52 = vand.u32 255, %v344_v49  ;;  %v365_v49 = vand.u32 15, %v3210_v34 }
  0xb1   : > { %4226 = vst [vmem:[#allocation23_spill] sm:$0xff] %v3204_v55 }
  0xb2   : > { %801 = vperm.xlu0 %2719, %v3073_v23   ;;  %797 = vperm.xlu2 %2718, %v3058_v19   ;;  %v594_v38 = vpop.permute.xlu2 %593  ;;  %4228 = vst [vmem:[#allocation25_spill] sm:$0xff] %v3208_v52  ;;  %v376_v54 = vand.u32 15, %v3208_v52 }
  0xb3   : > { %793 = vperm.xlu1 %2720, %v3064_v21   ;;  %v528_v44 = vpop.permute.xlu1 %527  ;;  %v3181_v45 = vpop.permute.xlu0 %522  ;;  %v655_v48 = vmul.f32 %v594_v38, %v559_v63  ;;  %v334_v63 = vunpack.c.3.s8 %v3128_v37 }
  0xb5   : > { %v671_v53 = vpack.c.bf16 %v655_v48, %v655_v48  ;;  %v3212_v37 = vand.u32 255, %v334_v63 }
  0xb7   : > { %688 = vst.msk [vmem:[#allocation2 + $0x20] sm:$0xf] %vm683_vm0, %v671_v53  ;;  %v3206_v53 = vcvt.s32.f32 %v373_v58  ;;  %v336_v58 = vunpack.c.1.s8 %v3143_v43  ;;  %v366_v62 = vand.u32 15, %v3212_v37 }
  0xb8   : > { %4229 = vst [vmem:[#allocation26_spill] sm:$0xff] %v3212_v37  ;;  %v3234_v37 = vcvt.s32.f32 %v365_v49  ;;  %v340_v49 = vunpack.c.1.s8 %v3172_v61 }
  0xb9   : > { %4227 = vst [vmem:[#allocation24_spill] sm:$0xff] %v3206_v53  ;;  %v3236_v52 = vcvt.s32.f32 %v366_v62 }
  0xba   : > { %813 = vperm.xlu0 %2719, %v3085_v26   ;;  %809 = vperm.xlu2 %2718, %v3070_v22   ;;  %v609_v3 = vpop.permute.xlu2 %608  ;;  %v337_v22 = vunpack.c.2.s8 %v3143_v43  ;;  %4231 = vst [vmem:[#allocation28_spill] sm:$0xff] %v3234_v37 }
  0xbb   : > { %805 = vperm.xlu1 %2720, %v3076_v24   ;;  %v543_v33 = vpop.permute.xlu1 %542  ;;  %v3202_v38 = vpop.permute.xlu0 %537  ;;  %v658_v48 = vmul.f32 %v609_v3, %v562_v60  ;;  %v555_v24 = vsub.f32 %v3204_v55, %v3138_v41  ;;  %v565_v60 = vsub.f32 %v3206_v53, %v528_v44  ;;  %v3230_v53 = vcvt.s32.f32 %v376_v54  ;;  %4232 = vst [vmem:[#allocation29_spill] sm:$0xff] %v3236_v52 }
  0xbc   : > { %v3228_v44 = vand.u32 255, %v337_v22  ;;  %v3232_v55 = vand.u32 255, %v336_v58  ;;  %v339_v22 = vunpack.c.0.s8 %v3172_v61  ;;  %v557_v54 = vsub.f32 %v3234_v37, %v3136_v40 }
  0xbd   : > { %v674_v51 = vpack.c.bf16 %v658_v48, %v658_v48  ;;  %4230 = vst [vmem:[#allocation27_spill] sm:$0xff] %v3230_v53  ;;  %v558_v58 = vsub.f32 %v3236_v52, %v3152_v47 }
  0xbe   : > { %v3254_v40 = vand.u32 255, %v339_v22 }
  0xbf   : > { %691 = vst.msk [vmem:[#allocation2 + $0x38] sm:$0xf] %vm683_vm0, %v674_v51 }
  0xc2   : > { %825 = vperm.xlu0 %2719, %v3097_v29   ;;  %821 = vperm.xlu2 %2718, %v3082_v25   ;;  %v624_v51 = vpop.permute.xlu2 %623 }
  0xc3   : > { %817 = vperm.xlu1 %2720, %v3088_v27   ;;  %v3226_v41 = vpop.permute.xlu0 %552  ;;  %v661_v63 = vmul.f32 %v624_v51, %v565_v60  ;;  %v574_v3 = vpop.permute.xlu1 %573  ;;  %v369_v27 = vand.u32 15, %v3228_v44  ;;  %v368_v60 = vand.u32 15, %v3232_v55 }
  0xc4   : > { %v651_v48 = vmul.f32 %v574_v3, %v555_v24  ;;  %v568_v24 = vsub.f32 %v3230_v53, %v543_v33  ;;  %v3258_v53 = vand.u32 255, %v340_v49 }
  0xc5   : > { %v677_v43 = vpack.c.bf16 %v661_v63, %v661_v63  ;;  %v3252_v63 = vcvt.s32.f32 %v369_v27  ;;  %v3256_v47 = vcvt.s32.f32 %v368_v60  ;;  %v371_v27 = vand.u32 15, %v3254_v40 }
  0xc6   : > { %v667_v25 = vpack.c.bf16 %v651_v48, %v651_v48  ;;  %v372_v60 = vand.u32 15, %v3258_v53 }
  0xc7   : > { %694 = vst.msk [vmem:[#allocation2 + $0x50] sm:$0xf] %vm683_vm0, %v677_v43  ;;  %v560_v22 = vsub.f32 %v3256_v47, %v3119_v35  ;;  %v3276_v35 = vcvt.s32.f32 %v371_v27 }
  0xc8   : > { %684 = vst.msk [vmem:[#allocation2] sm:$0xf] %vm683_vm0, %v667_v25 }
  0xc9   : > { %4233 = vst [vmem:[#allocation30_spill] sm:$0xff] %v3252_v63 }
  0xca   : > { %837 = vperm.xlu0 %2719, %v3106_v31   ;;  %833 = vperm.xlu2 %2718, %v3094_v28   ;;  %v639_v62 = vpop.permute.xlu2 %638  ;;  %4234 = vst [vmem:[#allocation31_spill] sm:$0xff] %v3256_v47 }
  0xcb   : > { %829 = vperm.xlu1 %2720, %v3100_v30   ;;  %v584_v25 = vpop.permute.xlu0 %583  ;;  %v664_v51 = vmul.f32 %v639_v62, %v568_v24  ;;  %v589_v33 = vpop.permute.xlu1 %588  ;;  %v561_v30 = vsub.f32 %v3252_v63, %v3164_v56  ;;  %v342_v24 = vunpack.c.3.s8 %v3172_v61  ;;  %4235 = vst [vmem:[#allocation32_spill] sm:$0xff] %v3276_v35 }
  0xcc   : > { %v653_v3 = vmul.f32 %v584_v25, %v557_v54  ;;  %v654_v48 = vmul.f32 %v589_v33, %v558_v58  ;;  %v343_v54 = vunpack.c.0.s8 %v3192_v57  ;;  %v2838_v58 = vmov 1  }
  0xcd   : > { %v680_v43 = vpack.c.bf16 %v664_v51, %v664_v51  ;;  %v3278_v62 = vand.u32 255, %v342_v24  ;;  %v3280_v25 = vcvt.s32.f32 %v372_v60 }
  0xce   : > { %v669_v52 = vpack.c.bf16 %v653_v3, %v653_v3  ;;  %v670_v37 = vpack.c.bf16 %v654_v48, %v654_v48  ;;  %v3282_v51 = vand.u32 255, %v343_v54 }
  0xcf   : > { %697 = vst.msk [vmem:[#allocation2 + $0x68] sm:$0xf] %vm683_vm0, %v680_v43  ;;  %v374_v48 = vand.u32 15, %v3278_v62  ;;  %v345_v43 = vunpack.c.2.s8 %v3192_v57  ;;  %v564_v27 = vsub.f32 %v3280_v25, %v3181_v45 }
  0xd0   : > { %686 = vst.msk [vmem:[#allocation2 + $0x10] sm:$0xf] %vm683_vm0, %v669_v52  ;;  %v375_v24 = vand.u32 15, %v3282_v51 }
  0xd1   : > { %687 = vst.msk [vmem:[#allocation2 + $0x18] sm:$0xf] %vm683_vm0, %v670_v37  ;;  %v3301_v45 = vand.u32 255, %v345_v43 }
  0xd2   : > { %2722 = vset.pattern.permute.xlu0 %v2838_v58  ;;  %2721 = vset.pattern.permute.xlu2 %v2838_v58  ;;  %4236 = vst [vmem:[#allocation33_spill] sm:$0xff] %v3280_v25  ;;  %v402_v25 = vshra.s32 %v3168_v59, 4 }
  0xd3   : > { %841 = vperm.xlu1 %2720, %v3109_v32   ;;  %931 = vperm.xlu0 %2722, %v3004_v6   ;;  %v599_v56 = vpop.permute.xlu0 %598  ;;  %v604_v52 = vpop.permute.xlu1 %603 }
  0xd4   : > { %v656_v49 = vmul.f32 %v599_v56, %v560_v22  ;;  %926 = vperm.xlu2 %2721, %v2992_v2   ;;  %v657_v61 = vmul.f32 %v604_v52, %v561_v30  ;;  %v3274_v37 = vpop.permute.xlu2 %701  ;;  %v563_v30 = vsub.f32 %v3276_v35, %v3124_v36  ;;  %v346_v22 = vunpack.c.3.s8 %v3192_v57 }
  0xd5   : > { %v3299_v36 = vcvt.s32.f32 %v374_v48 }
  0xd6   : > { %v672_v33 = vpack.c.bf16 %v656_v49, %v656_v49  ;;  %v673_v3 = vpack.c.bf16 %v657_v61, %v657_v61  ;;  %v3303_v61 = vcvt.s32.f32 %v375_v24  ;;  %v3305_v57 = vand.u32 255, %v346_v22 }
  0xd7   : > { %4237 = vst [vmem:[#allocation34_spill] sm:$0xff] %v3299_v36 }
  0xd8   : > { %689 = vst.msk [vmem:[#allocation2 + $0x28] sm:$0xf] %vm683_vm0, %v672_v33  ;;  %v567_v48 = vsub.f32 %v3303_v61, %v3202_v38  ;;  %v378_v43 = vand.u32 15, %v3305_v57 }
  0xd9   : > { %690 = vst.msk [vmem:[#allocation2 + $0x30] sm:$0xf] %vm683_vm0, %v673_v3  ;;  %v566_v3 = vsub.f32 %v3299_v36, %v3133_v39 }
  0xda   : > { %4238 = vst [vmem:[#allocation35_spill] sm:$0xff] %v3303_v61 }
  0xdb   : > { %2723 = vset.pattern.permute.xlu1 %v2838_v58  ;;  %956 = vperm.xlu0 %2722, %v3016_v9   ;;  %v614_v60 = vpop.permute.xlu0 %613  ;;  %v619_v54 = vpop.permute.xlu1 %618 }
  0xdc   : > { %v659_v56 = vmul.f32 %v614_v60, %v563_v30  ;;  %941 = vperm.xlu2 %2721, %v3001_v5   ;;  %936 = vperm.xlu1 %2723, %v2989_v1   ;;  %v660_v52 = vmul.f32 %v619_v54, %v564_v27  ;;  %v3297_v49 = vpop.permute.xlu2 %713  ;;  %v377_v30 = vand.u32 15, %v3301_v45 }
  0xde   : > { %v675_v58 = vpack.c.bf16 %v659_v56, %v659_v56  ;;  %v676_v33 = vpack.c.bf16 %v660_v52, %v660_v52  ;;  %v3320_v39 = vcvt.s32.f32 %v377_v30  ;;  %v3322_v56 = vcvt.s32.f32 %v378_v43 }
  0xe0   : > { %692 = vst.msk [vmem:[#allocation2 + $0x40] sm:$0xf] %vm683_vm0, %v675_v58  ;;  %v569_v58 = vsub.f32 %v3320_v39, %v3149_v46 }
  0xe1   : > { %693 = vst.msk [vmem:[#allocation2 + $0x48] sm:$0xf] %vm683_vm0, %v676_v33  ;;  %v570_v33 = vsub.f32 %v3322_v56, %v3226_v41 }
  0xe2   : > { %4239 = vst [vmem:[#allocation36_spill] sm:$0xff] %v3320_v39 }
  0xe3   : > { %971 = vperm.xlu0 %2722, %v3028_v12   ;;  %v629_v27 = vpop.permute.xlu0 %628  ;;  %v634_v24 = vpop.permute.xlu1 %633  ;;  %4240 = vst [vmem:[#allocation37_spill] sm:$0xff] %v3322_v56 }
  0xe4   : > { %v662_v22 = vmul.f32 %v629_v27, %v566_v3  ;;  %951 = vperm.xlu2 %2721, %v2998_v4   ;;  %946 = vperm.xlu1 %2723, %v2986_v0   ;;  %v663_v60 = vmul.f32 %v634_v24, %v567_v48  ;;  %v3318_v54 = vpop.permute.xlu2 %721 }
  0xe6   : > { %v678_v52 = vpack.c.bf16 %v662_v22, %v662_v22  ;;  %v679_v38 = vpack.c.bf16 %v663_v60, %v663_v60  ;;  %v396_v60 = vshra.s32 %v3140_v42, 4 }
  0xe8   : > { %695 = vst.msk [vmem:[#allocation2 + $0x58] sm:$0xf] %vm683_vm0, %v678_v52 }
  0xe9   : > { %696 = vst.msk [vmem:[#allocation2 + $0x60] sm:$0xf] %vm683_vm0, %v679_v38  ;;  %v412_v38 = vand.u32 15, %v396_v60 }
  0xeb   : > { %986 = vperm.xlu0 %2722, %v3040_v15   ;;  %v644_v3 = vpop.permute.xlu0 %643  ;;  %v649_v48 = vpop.permute.xlu1 %648 }
  0xec   : > { %v665_v30 = vmul.f32 %v644_v3, %v569_v58  ;;  %966 = vperm.xlu2 %2721, %v3010_v7   ;;  %961 = vperm.xlu1 %2723, %v3013_v8   ;;  %v666_v43 = vmul.f32 %v649_v48, %v570_v33  ;;  %v3333_v27 = vpop.permute.xlu2 %733  ;;  %v3352_v3 = vcvt.s32.f32 %v412_v38 }
  0xee   : > { %v681_v24 = vpack.c.bf16 %v665_v30, %v665_v30  ;;  %v682_v22 = vpack.c.bf16 %v666_v43, %v666_v43  ;;  %4241 = vst [vmem:[#allocation38_spill] sm:$0xff] %v3352_v3  ;;  %v399_v30 = vshra.s32 %v3156_v50, 4 }
  0xf0   : > { %698 = vst.msk [vmem:[#allocation2 + $0x70] sm:$0xf] %vm683_vm0, %v681_v24  ;;  %v415_v43 = vand.u32 15, %v399_v30 }
  0xf1   : > { %699 = vst.msk [vmem:[#allocation2 + $0x78] sm:$0xf] %vm683_vm0, %v682_v22 }
  0xf2   : > { %v3361_v61 = vcvt.s32.f32 %v415_v43 }
  0xf3   : > { %1001 = vperm.xlu0 %2722, %v3049_v17  }
  0xf4   : > { %981 = vperm.xlu2 %2721, %v3022_v10   ;;  %976 = vperm.xlu1 %2723, %v3025_v11   ;;  %v706_v46 = vpop.permute.xlu0 %705  ;;  %v3340_v41 = vpop.permute.xlu2 %745  ;;  %4242 = vst [vmem:[#allocation39_spill] sm:$0xff] %v3361_v61 }
  0xf5   : > { %v3343_v52 = vpop.permute.xlu1 %709  ;;  %v765_v42 = vsub.f32 %v3352_v3, %v706_v46  ;;  %v418_v46 = vand.u32 15, %v402_v25 }
  0xf7   : > { %v3372_v3 = vcvt.s32.f32 %v418_v46 }
  0xf9   : > { %4243 = vst [vmem:[#allocation40_spill] sm:$0xff] %v3372_v3 }
  0xfb   : > { %1032 = vperm.xlu0 %2722, %v3061_v20  }
  0xfc   : > { %996 = vperm.xlu2 %2721, %v3034_v13   ;;  %991 = vperm.xlu1 %2723, %v3037_v14   ;;  %v3348_v58 = vpop.permute.xlu0 %725  ;;  %v3350_v33 = vpop.permute.xlu2 %757 }
  0xfd   : > { %v718_v48 = vpop.permute.xlu1 %717 }
  0xfe   : > { %v768_v50 = vsub.f32 %v3361_v61, %v718_v48  ;;  %v4245_v48 = vld [vmem:[#allocation20_spill] sm:$0xff] }
  0xff   : > { %v395_v25 = vshra.s32 %v4245_v48, 4  ;;  %v400_v48 = vshra.s32 %v3232_v55, 4 }
 0x101   : > { %v411_v35 = vand.u32 15, %v395_v25  ;;  %v4252_v25 = vld [vmem:[#allocation26_spill] sm:$0xff] }
 0x103   : > { %1047 = vperm.xlu0 %2722, %v3073_v23  }
 0x104   : > { %1027 = vperm.xlu2 %2721, %v3046_v16   ;;  %1022 = vperm.xlu1 %2723, %v3052_v18   ;;  %v3359_v24 = vpop.permute.xlu0 %737  ;;  %v786_v22 = vpop.permute.xlu2 %785 }
 0x105   : > { %v845_v60 = vmul.f32 %v786_v22, %v765_v42  ;;  %v730_v56 = vpop.permute.xlu1 %729 }
 0x106   : > { %v771_v63 = vsub.f32 %v3372_v3, %v730_v56  ;;  %v3389_v3 = vcvt.s32.f32 %v411_v35  ;;  %v4254_v35 = vld [vmem:[#allocation16_spill] sm:$0xff] }
 0x107   : > { %v861_v38 = vpack.c.bf16 %v845_v60, %v845_v60  ;;  %v397_v60 = vshra.s32 %v3210_v34, 4 }
 0x109   : > { %877 = vst.msk [vmem:[#allocation2 + $0xc] sm:$0xf] %vm683_vm0, %v861_v38  ;;  %v4244_v38 = vld [vmem:[#allocation22_spill] sm:$0xff]  ;;  %v413_v61 = vand.u32 15, %v397_v60 }
 0x10a   : > { %v405_v39 = vshra.s32 %v4244_v38, 4 }
 0x10b   : > { %1062 = vperm.xlu0 %2722, %v3085_v26   ;;  %v3384_v47 = vcvt.s32.f32 %v413_v61 }
 0x10c   : > { %1042 = vperm.xlu2 %2721, %v3058_v19   ;;  %1037 = vperm.xlu1 %2723, %v3064_v21   ;;  %v3369_v30 = vpop.permute.xlu0 %749  ;;  %v798_v42 = vpop.permute.xlu2 %797  ;;  %v421_v36 = vand.u32 15, %v405_v39  ;;  %v4250_v39 = vld [vmem:[#allocation25_spill] sm:$0xff] }
 0x10d   : > { %v848_v22 = vmul.f32 %v798_v42, %v768_v50  ;;  %v742_v43 = vpop.permute.xlu1 %741  ;;  %v4246_v50 = vld [vmem:[#allocation13_spill] sm:$0xff]  ;;  %v4247_v42 = vld [vmem:[#allocation14_spill] sm:$0xff]  ;;  %4248 = vst [vmem:[#allocation22_spill] sm:$0xff] %v3384_v47 }
 0x10e   : > { %v3386_v60 = vcvt.s32.f32 %v421_v36  ;;  %4251 = vst [vmem:[#allocation25_spill] sm:$0xff] %v3389_v3  ;;  %v764_v36 = vsub.f32 %v3389_v3, %v3274_v37 }
 0x10f   : > { %v864_v59 = vpack.c.bf16 %v848_v22, %v848_v22 }
 0x110   : > { %4249 = vst [vmem:[#allocation20_spill] sm:$0xff] %v3386_v60 }
 0x111   : > { %880 = vst.msk [vmem:[#allocation2 + $0x24] sm:$0xf] %vm683_vm0, %v864_v59  ;;  %v408_v59 = vshra.s32 %v4250_v39, 4 }
 0x113   : > { %1077 = vperm.xlu0 %2722, %v3097_v29   ;;  %v424_v55 = vand.u32 15, %v408_v59  ;;  %v403_v59 = vshra.s32 %v3254_v40, 4 }
 0x114   : > { %1057 = vperm.xlu2 %2721, %v4246_v50   ;;  %1052 = vperm.xlu1 %2723, %v4247_v42   ;;  %v3381_v34 = vpop.permute.xlu0 %761  ;;  %v810_v46 = vpop.permute.xlu2 %809  ;;  %v398_v50 = vshra.s32 %v4252_v25, 4  ;;  %v416_v42 = vand.u32 15, %v400_v48 }
 0x115   : > { %v851_v22 = vmul.f32 %v810_v46, %v771_v63  ;;  %v754_v38 = vpop.permute.xlu1 %753  ;;  %v766_v63 = vsub.f32 %v3384_v47, %v3343_v52  ;;  %v774_v46 = vsub.f32 %v3386_v60, %v742_v43  ;;  %v401_v52 = vshra.s32 %v3228_v44, 4 }
 0x116   : > { %v414_v61 = vand.u32 15, %v398_v50  ;;  %v3401_v19 = vcvt.s32.f32 %v416_v42  ;;  %v3405_v60 = vcvt.s32.f32 %v424_v55  ;;  %v2839_v44 = vmov 5  }
 0x117   : > { %v867_v56 = vpack.c.bf16 %v851_v22, %v851_v22  ;;  %v4253_v22 = vld [vmem:[#allocation15_spill] sm:$0xff] }
 0x118   : > { %4255 = vst [vmem:[#allocation26_spill] sm:$0xff] %v3401_v19  ;;  %v3407_v3 = vcvt.s32.f32 %v414_v61  ;;  %v769_v42 = vsub.f32 %v3401_v19, %v3318_v54 }
 0x119   : > { %883 = vst.msk [vmem:[#allocation2 + $0x3c] sm:$0xf] %vm683_vm0, %v867_v56 }
 0x11a   : > { %v767_v40 = vsub.f32 %v3407_v3, %v3297_v49 }
 0x11b   : > { %1092 = vperm.xlu0 %2722, %v3106_v31  }
 0x11c   : > { %1072 = vperm.xlu2 %2721, %v4253_v22   ;;  %1067 = vperm.xlu1 %2723, %v4254_v35   ;;  %v790_v39 = vpop.permute.xlu0 %789  ;;  %v822_v25 = vpop.permute.xlu2 %821  ;;  %v417_v35 = vand.u32 15, %v401_v52  ;;  %v404_v52 = vshra.s32 %v3258_v53, 4 }
 0x11d   : > { %v846_v56 = vmul.f32 %v790_v39, %v766_v63  ;;  %v854_v48 = vmul.f32 %v822_v25, %v774_v46  ;;  %v782_v21 = vpop.permute.xlu1 %781  ;;  %v419_v63 = vand.u32 15, %v403_v59  ;;  %v4256_v46 = vld [vmem:[#allocation17_spill] sm:$0xff] }
 0x11e   : > { %v844_v43 = vmul.f32 %v782_v21, %v764_v36  ;;  %v777_v21 = vsub.f32 %v3405_v60, %v754_v38  ;;  %v3420_v25 = vcvt.s32.f32 %v417_v35 }
 0x11f   : > { %v862_v37 = vpack.c.bf16 %v846_v56, %v846_v56  ;;  %v870_v50 = vpack.c.bf16 %v854_v48, %v854_v48  ;;  %v406_v56 = vshra.s32 %v3278_v62, 4 }
 0x120   : > { %v860_v47 = vpack.c.bf16 %v844_v43, %v844_v43 }
 0x121   : > { %878 = vst.msk [vmem:[#allocation2 + $0x14] sm:$0xf] %vm683_vm0, %v862_v37  ;;  %v422_v59 = vand.u32 15, %v406_v56  ;;  %v420_v37 = vand.u32 15, %v404_v52 }
 0x122   : > { %886 = vst.msk [vmem:[#allocation2 + $0x54] sm:$0xf] %vm683_vm0, %v870_v50 }
 0x123   : > { %876 = vst.msk [vmem:[#allocation2 + $0x4] sm:$0xf] %vm683_vm0, %v860_v47  ;;  %2725 = vset.pattern.permute.xlu0 %v2839_v44  ;;  %v3422_v47 = vcvt.s32.f32 %v419_v63  ;;  %v3438_v63 = vcvt.s32.f32 %v422_v59 }
 0x124   : > { %1087 = vperm.xlu2 %2721, %v3094_v28   ;;  %1082 = vperm.xlu1 %2723, %v4256_v46   ;;  %v802_v55 = vpop.permute.xlu0 %801  ;;  %v834_v36 = vpop.permute.xlu2 %833 }
 0x125   : > { %1154 = vperm.xlu0 %2725, %v3004_v6   ;;  %v849_v61 = vmul.f32 %v802_v55, %v769_v42  ;;  %v857_v54 = vmul.f32 %v834_v36, %v777_v21  ;;  %v794_v39 = vpop.permute.xlu1 %793  ;;  %4257 = vst [vmem:[#allocation15_spill] sm:$0xff] %v3422_v47  ;;  %v770_v6 = vsub.f32 %v3420_v25, %v3348_v58  ;;  %v407_v55 = vshra.s32 %v3282_v51, 4 }
 0x126   : > { %v847_v38 = vmul.f32 %v794_v39, %v767_v40  ;;  %v772_v35 = vsub.f32 %v3422_v47, %v3333_v27  ;;  %v409_v27 = vshra.s32 %v3301_v45, 4  ;;  %v3441_v40 = vcvt.s32.f32 %v420_v37 }
 0x127   : > { %v865_v48 = vpack.c.bf16 %v849_v61, %v849_v61  ;;  %v873_v49 = vpack.c.bf16 %v857_v54, %v857_v54  ;;  %v423_v54 = vand.u32 15, %v407_v55 }
 0x128   : > { %v863_v43 = vpack.c.bf16 %v847_v38, %v847_v38  ;;  %v773_v61 = vsub.f32 %v3441_v40, %v3359_v24  ;;  %v410_v24 = vshra.s32 %v3305_v57, 4 }
 0x129   : > { %881 = vst.msk [vmem:[#allocation2 + $0x2c] sm:$0xf] %vm683_vm0, %v865_v48 }
 0x12a   : > { %889 = vst.msk [vmem:[#allocation2 + $0x6c] sm:$0xf] %vm683_vm0, %v873_v49  ;;  %v3457_v49 = vcvt.s32.f32 %v423_v54  ;;  %v4263_v54 = vld [vmem:[#allocation28_spill] sm:$0xff] }
 0x12b   : > { %879 = vst.msk [vmem:[#allocation2 + $0x1c] sm:$0xf] %vm683_vm0, %v863_v43 }
 0x12c   : > { %2724 = vset.pattern.permute.xlu2 %v2839_v44  ;;  %1097 = vperm.xlu1 %2723, %v3109_v32   ;;  %v814_v62 = vpop.permute.xlu0 %813 }
 0x12d   : > { %1174 = vperm.xlu0 %2725, %v3016_v9   ;;  %v852_v53 = vmul.f32 %v814_v62, %v772_v35  ;;  %1150 = vperm.xlu2 %2724, %v2992_v2   ;;  %v806_v50 = vpop.permute.xlu1 %805  ;;  %v775_v2 = vsub.f32 %v3438_v63, %v3340_v41  ;;  %v425_v9 = vand.u32 15, %v409_v27 }
 0x12e   : > { %v850_v58 = vmul.f32 %v806_v50, %v770_v6  ;;  %v3436_v42 = vpop.permute.xlu2 %926 }
 0x12f   : > { %v868_v21 = vpack.c.bf16 %v852_v53, %v852_v53  ;;  %v3455_v48 = vcvt.s32.f32 %v425_v9 }
 0x130   : > { %v866_v36 = vpack.c.bf16 %v850_v58, %v850_v58  ;;  %v4259_v58 = vld [vmem:[#allocation18_spill] sm:$0xff] }
 0x131   : > { %884 = vst.msk [vmem:[#allocation2 + $0x44] sm:$0xf] %vm683_vm0, %v868_v21 }
 0x132   : > { %882 = vst.msk [vmem:[#allocation2 + $0x34] sm:$0xf] %vm683_vm0, %v866_v36  ;;  %v4261_v36 = vld [vmem:[#allocation11_spill] sm:$0xff] }
 0x134   : > { %2726 = vset.pattern.permute.xlu1 %v2839_v44  ;;  %v826_v45 = vpop.permute.xlu0 %825 }
 0x135   : > { %1186 = vperm.xlu0 %2725, %v3028_v12   ;;  %v855_v39 = vmul.f32 %v826_v45, %v775_v2  ;;  %1162 = vperm.xlu2 %2724, %v3001_v5   ;;  %v818_v51 = vpop.permute.xlu1 %817  ;;  %v778_v5 = vsub.f32 %v3455_v48, %v3350_v33  ;;  %v426_v12 = vand.u32 15, %v410_v24 }
 0x136   : > { %1158 = vperm.xlu1 %2726, %v2989_v1   ;;  %v853_v38 = vmul.f32 %v818_v51, %v773_v61  ;;  %v3453_v56 = vpop.permute.xlu2 %941  ;;  %v776_v1 = vsub.f32 %v3457_v49, %v3369_v30 }
 0x137   : > { %v871_v41 = vpack.c.bf16 %v855_v39, %v855_v39  ;;  %v3471_v37 = vcvt.s32.f32 %v426_v12  ;;  %v4264_v39 = vld [vmem:[#allocation21_spill] sm:$0xff] }
 0x138   : > { %v869_v44 = vpack.c.bf16 %v853_v38, %v853_v38 }
 0x139   : > { %887 = vst.msk [vmem:[#allocation2 + $0x5c] sm:$0xf] %vm683_vm0, %v871_v41  ;;  %v4266_v41 = vld [vmem:[#allocation14_spill] sm:$0xff] }
 0x13a   : > { %885 = vst.msk [vmem:[#allocation2 + $0x4c] sm:$0xf] %vm683_vm0, %v869_v44 }
 0x13b   : > { %4258 = vst [vmem:[#allocation17_spill] sm:$0xff] %v3471_v37 }
 0x13c   : > { %v838_v52 = vpop.permute.xlu0 %837 }
 0x13d   : > { %1198 = vperm.xlu0 %2725, %v3040_v15   ;;  %v858_v43 = vmul.f32 %v838_v52, %v778_v5  ;;  %1170 = vperm.xlu2 %2724, %v2998_v4   ;;  %v830_v6 = vpop.permute.xlu1 %829  ;;  %v779_v15 = vsub.f32 %v3471_v37, %v3381_v34 }
 0x13e   : > { %1166 = vperm.xlu1 %2726, %v2986_v0   ;;  %v856_v57 = vmul.f32 %v830_v6, %v776_v1  ;;  %v3469_v35 = vpop.permute.xlu2 %951  ;;  %v4267_v6 = vld [vmem:[#allocation31_spill] sm:$0xff] }
 0x13f   : > { %v874_v59 = vpack.c.bf16 %v858_v43, %v858_v43  ;;  %v3519_v43 = vld [vmem:[%s2973_s17 + $0x8] sm:$0xff] }
 0x140   : > { %v872_v33 = vpack.c.bf16 %v856_v57, %v856_v57  ;;  %v4268_v57 = vld [vmem:[#allocation23_spill] sm:$0xff] }
 0x141   : > { %890 = vst.msk [vmem:[#allocation2 + $0x74] sm:$0xf] %vm683_vm0, %v874_v59  ;;  %v1004_v59 = vsub.f32 %v4268_v57, %v3436_v42 }
 0x142   : > { %888 = vst.msk [vmem:[#allocation2 + $0x64] sm:$0xf] %vm683_vm0, %v872_v33  ;;  %v4269_v33 = vld [vmem:[#allocation24_spill] sm:$0xff] }
 0x145   : > { %1210 = vperm.xlu0 %2725, %v3049_v17   ;;  %1182 = vperm.xlu2 %2724, %v3010_v7   ;;  %v842_v4 = vpop.permute.xlu1 %841  ;;  %v932_v0 = vpop.permute.xlu0 %931 }
 0x146   : > { %1178 = vperm.xlu1 %2726, %v3013_v8   ;;  %v859_v30 = vmul.f32 %v842_v4, %v779_v15  ;;  %v3480_v62 = vpop.permute.xlu2 %966  ;;  %v2840_v4 = vmov 2  }
 0x148   : > { %v875_v53 = vpack.c.bf16 %v859_v30, %v859_v30  ;;  %v4270_v30 = vld [vmem:[#allocation16_spill] sm:$0xff] }
 0x14a   : > { %891 = vst.msk [vmem:[#allocation2 + $0x7c] sm:$0xf] %vm683_vm0, %v875_v53 }
 0x14d   : > { %1238 = vperm.xlu0 %2725, %v3061_v20   ;;  %1194 = vperm.xlu2 %2724, %v3022_v10   ;;  %v3485_v50 = vpop.permute.xlu0 %956  ;;  %v1005_v10 = vsub.f32 %v4259_v58, %v932_v0 }
 0x14e   : > { %1190 = vperm.xlu1 %2726, %v3025_v11   ;;  %v3488_v17 = vpop.permute.xlu2 %981  ;;  %v937_v7 = vpop.permute.xlu1 %936 }
 0x14f   : > { %v1006_v45 = vsub.f32 %v4263_v54, %v937_v7 }
 0x155   : > { %1250 = vperm.xlu0 %2725, %v3073_v23   ;;  %1206 = vperm.xlu2 %2724, %v3034_v13   ;;  %v3492_v8 = vpop.permute.xlu0 %971 }
 0x156   : > { %1202 = vperm.xlu1 %2726, %v3037_v14   ;;  %v3495_v34 = vpop.permute.xlu2 %996  ;;  %v947_v20 = vpop.permute.xlu1 %946  ;;  %v4260_v14 = vld [vmem:[#allocation19_spill] sm:$0xff] }
 0x157   : > { %v1008_v55 = vsub.f32 %v4260_v14, %v947_v20 }
 0x15d   : > { %1262 = vperm.xlu0 %2725, %v3085_v26   ;;  %1234 = vperm.xlu2 %2724, %v3046_v16   ;;  %v3500_v11 = vpop.permute.xlu0 %986  ;;  %v4262_v16 = vld [vmem:[#allocation12_spill] sm:$0xff] }
 0x15e   : > { %1230 = vperm.xlu1 %2726, %v3052_v18   ;;  %v1028_v23 = vpop.permute.xlu2 %1027  ;;  %v962_v27 = vpop.permute.xlu1 %961 }
 0x15f   : > { %v1101_v13 = vmul.f32 %v1028_v23, %v1005_v10  ;;  %v1011_v51 = vsub.f32 %v4264_v39, %v962_v27 }
 0x161   : > { %v1117_v21 = vpack.c.bf16 %v1101_v13, %v1101_v13  ;;  %v3532_v13 = vld [vmem:[%s2973_s17 + $0x30] sm:$0xff] }
 0x163   : > { %1134 = vst.msk [vmem:[#allocation2 + $0x8] sm:$0xf] %vm1132_vm1, %v1117_v21 }
 0x165   : > { %1274 = vperm.xlu0 %2725, %v3097_v29   ;;  %1246 = vperm.xlu2 %2724, %v4261_v36   ;;  %v3507_v26 = vpop.permute.xlu0 %1001  ;;  %v4265_v29 = vld [vmem:[#allocation13_spill] sm:$0xff] }
 0x166   : > { %1242 = vperm.xlu1 %2726, %v4262_v16   ;;  %v1043_v2 = vpop.permute.xlu2 %1042  ;;  %v977_v9 = vpop.permute.xlu1 %976  ;;  %v4273_v16 = vld [vmem:[#allocation27_spill] sm:$0xff] }
 0x167   : > { %v1104_v18 = vmul.f32 %v1043_v2, %v1008_v55  ;;  %v1014_v15 = vsub.f32 %v4269_v33, %v977_v9  ;;  %v4272_v55 = vld [vmem:[#allocation29_spill] sm:$0xff] }
 0x168   : > { %v1007_v36 = vsub.f32 %v4272_v55, %v3453_v56  ;;  %v3546_v56 = vld [vmem:[%s2973_s17 + $0x48] sm:$0xff] }
 0x169   : > { %v1120_v61 = vpack.c.bf16 %v1104_v18, %v1104_v18 }
 0x16b   : > { %1137 = vst.msk [vmem:[#allocation2 + $0x20] sm:$0xf] %vm1132_vm1, %v1120_v61 }
 0x16d   : > { %1286 = vperm.xlu0 %2725, %v3106_v31   ;;  %1258 = vperm.xlu2 %2724, %v4265_v29   ;;  %v1033_v38 = vpop.permute.xlu0 %1032  ;;  %v1009_v31 = vsub.f32 %v4267_v6, %v3469_v35 }
 0x16e   : > { %1254 = vperm.xlu1 %2726, %v4266_v41   ;;  %v1102_v24 = vmul.f32 %v1033_v38, %v1006_v45  ;;  %v1058_v44 = vpop.permute.xlu2 %1057  ;;  %v992_v5 = vpop.permute.xlu1 %991 }
 0x16f   : > { %v1107_v1 = vmul.f32 %v1058_v44, %v1011_v51  ;;  %v1017_v2 = vsub.f32 %v4273_v16, %v992_v5  ;;  %v4275_v44 = vld [vmem:[#allocation30_spill] sm:$0xff] }
 0x170   : > { %v1118_v12 = vpack.c.bf16 %v1102_v24, %v1102_v24  ;;  %v1010_v5 = vsub.f32 %v4275_v44, %v3485_v50  ;;  %v3564_v50 = vld [vmem:[%s2973_s17 + $0x60] sm:$0xff]  ;;  %v3667_v44 = vld [vmem:[%s2968_s13 + $0x70] sm:$0xff]  ;;  %v4281_v16 = vld [vmem:[#allocation22_spill] sm:$0xff] }
 0x171   : > { %v1123_v52 = vpack.c.bf16 %v1107_v1, %v1107_v1 }
 0x172   : > { %1135 = vst.msk [vmem:[#allocation2 + $0x10] sm:$0xf] %vm1132_vm1, %v1118_v12 }
 0x173   : > { %1140 = vst.msk [vmem:[#allocation2 + $0x38] sm:$0xf] %vm1132_vm1, %v1123_v52 }
 0x175   : > { %2728 = vset.pattern.permute.xlu0 %v2840_v4  ;;  %1270 = vperm.xlu2 %2724, %v4253_v22   ;;  %v1048_v0 = vpop.permute.xlu0 %1047  ;;  %v4271_v22 = vld [vmem:[#allocation32_spill] sm:$0xff] }
 0x176   : > { %1266 = vperm.xlu1 %2726, %v4270_v30   ;;  %1380 = vperm.xlu0 %2728, %v3519_v43   ;;  %v1105_v53 = vmul.f32 %v1048_v0, %v1009_v31  ;;  %v1073_v7 = vpop.permute.xlu2 %1072  ;;  %v1023_v20 = vpop.permute.xlu1 %1022  ;;  %v1012_v21 = vsub.f32 %v4271_v22, %v3480_v62  ;;  %v4276_v0 = vld [vmem:[#allocation36_spill] sm:$0xff]  ;;  %v3569_v30 = vld [vmem:[%s2973_s17 + $0x18] sm:$0xff] }
 0x177   : > { %v1110_v10 = vmul.f32 %v1073_v7, %v1014_v15  ;;  %v1100_v35 = vmul.f32 %v1023_v20, %v1004_v59  ;;  %v4277_v7 = vld [vmem:[#allocation33_spill] sm:$0xff]  ;;  %v3683_v22 = vld [vmem:[%s2968_s13 + $0x38] sm:$0xff] }
 0x178   : > { %v1121_v23 = vpack.c.bf16 %v1105_v53, %v1105_v53  ;;  %v3572_v53 = vld [vmem:[%s2973_s17 + $0x10] sm:$0xff]  ;;  %v1013_v20 = vsub.f32 %v4277_v7, %v3492_v8  ;;  %v3584_v8 = vld [vmem:[%s2973_s17 + $0x78] sm:$0xff] }
 0x179   : > { %v1126_v27 = vpack.c.bf16 %v1110_v10, %v1110_v10  ;;  %v1116_v42 = vpack.c.bf16 %v1100_v35, %v1100_v35 }
 0x17a   : > { %1138 = vst.msk [vmem:[#allocation2 + $0x28] sm:$0xf] %vm1132_vm1, %v1121_v23 }
 0x17b   : > { %1143 = vst.msk [vmem:[#allocation2 + $0x50] sm:$0xf] %vm1132_vm1, %v1126_v27 }
 0x17c   : > { %1133 = vst.msk [vmem:[#allocation2] sm:$0xf] %vm1132_vm1, %v1116_v42 }
 0x17d   : > { %1282 = vperm.xlu2 %2724, %v3094_v28   ;;  %v1063_v9 = vpop.permute.xlu0 %1062  ;;  %v4274_v28 = vld [vmem:[#allocation34_spill] sm:$0xff] }
 0x17e   : > { %1278 = vperm.xlu1 %2726, %v4256_v46   ;;  %1405 = vperm.xlu0 %2728, %v3532_v13   ;;  %v1108_v18 = vmul.f32 %v1063_v9, %v1012_v21  ;;  %v1088_v61 = vpop.permute.xlu2 %1087  ;;  %v1038_v45 = vpop.permute.xlu1 %1037  ;;  %v1015_v24 = vsub.f32 %v4274_v28, %v3488_v17  ;;  %v3552_v46 = vld [vmem:[%s2973_s17] sm:$0xff] }
 0x17f   : > { %v1113_v62 = vmul.f32 %v1088_v61, %v1017_v2  ;;  %v1103_v51 = vmul.f32 %v1038_v45, %v1007_v36  ;;  %v3590_v36 = vld [vmem:[%s2973_s17 + $0x20] sm:$0xff] }
 0x180   : > { %v1124_v29 = vpack.c.bf16 %v1108_v18, %v1108_v18  ;;  %v4278_v2 = vld [vmem:[#allocation35_spill] sm:$0xff] }
 0x181   : > { %v1129_v38 = vpack.c.bf16 %v1113_v62, %v1113_v62  ;;  %v1119_v41 = vpack.c.bf16 %v1103_v51, %v1103_v51  ;;  %v1016_v9 = vsub.f32 %v4278_v2, %v3500_v11  ;;  %v3604_v11 = vld [vmem:[%s2973_s17 + $0x40] sm:$0xff] }
 0x182   : > { %1141 = vst.msk [vmem:[#allocation2 + $0x40] sm:$0xf] %vm1132_vm1, %v1124_v29  ;;  %v3601_v29 = vld [vmem:[%s2968_s13 + $0x10] sm:$0xff] }
 0x183   : > { %1146 = vst.msk [vmem:[#allocation2 + $0x68] sm:$0xf] %vm1132_vm1, %v1129_v38  ;;  %v3607_v38 = vld [vmem:[%s2973_s17 + $0x38] sm:$0xff] }
 0x184   : > { %1136 = vst.msk [vmem:[#allocation2 + $0x18] sm:$0xf] %vm1132_vm1, %v1119_v41  ;;  %v4279_v41 = vld [vmem:[#allocation37_spill] sm:$0xff] }
 0x185   : > { %2727 = vset.pattern.permute.xlu2 %v2840_v4  ;;  %v1078_v1 = vpop.permute.xlu0 %1077 }
 0x186   : > { %1290 = vperm.xlu1 %2726, %v3109_v32   ;;  %1420 = vperm.xlu0 %2728, %v3546_v56   ;;  %v1111_v12 = vmul.f32 %v1078_v1, %v1015_v24  ;;  %v1053_v52 = vpop.permute.xlu1 %1052  ;;  %v1018_v32 = vsub.f32 %v4276_v0, %v3495_v34  ;;  %v1019_v24 = vsub.f32 %v4279_v41, %v3507_v26  ;;  %v3623_v26 = vld [vmem:[%s2973_s17 + $0x58] sm:$0xff]  ;;  %v4282_v0 = vld [vmem:[#allocation39_spill] sm:$0xff] }
 0x187   : > { %1375 = vperm.xlu2 %2727, %v3552_v46   ;;  %v1106_v17 = vmul.f32 %v1053_v52, %v1010_v5  ;;  %v3559_v31 = vpop.permute.xlu2 %1150 }
 0x188   : > { %v1127_v59 = vpack.c.bf16 %v1111_v12, %v1111_v12 }
 0x189   : > { %v1122_v15 = vpack.c.bf16 %v1106_v17, %v1106_v17 }
 0x18a   : > { %1144 = vst.msk [vmem:[#allocation2 + $0x58] sm:$0xf] %vm1132_vm1, %v1127_v59  ;;  %v3620_v59 = vld [vmem:[%s2968_s13 + $0x28] sm:$0xff] }
 0x18b   : > { %1139 = vst.msk [vmem:[#allocation2 + $0x30] sm:$0xf] %vm1132_vm1, %v1122_v15  ;;  %v3626_v15 = vld [vmem:[%s2973_s17 + $0x50] sm:$0xff] }
 0x18d   : > { %v1093_v10 = vpop.permute.xlu0 %1092 }
 0x18e   : > { %2729 = vset.pattern.permute.xlu1 %v2840_v4  ;;  %1435 = vperm.xlu0 %2728, %v3564_v50   ;;  %v1114_v35 = vmul.f32 %v1093_v10, %v1018_v32  ;;  %v1068_v23 = vpop.permute.xlu1 %1067  ;;  %v3587_v4 = vld [vmem:[%s2973_s17 + $0x28] sm:$0xff] }
 0x18f   : > { %1390 = vperm.xlu2 %2727, %v3569_v30   ;;  %1385 = vperm.xlu1 %2729, %v3572_v53   ;;  %v1109_v34 = vmul.f32 %v1068_v23, %v1013_v20  ;;  %v3579_v27 = vpop.permute.xlu2 %1162  ;;  %v3639_v23 = vld [vmem:[%s2973_s17 + $0x70] sm:$0xff] }
 0x190   : > { %v1130_v42 = vpack.c.bf16 %v1114_v35, %v1114_v35  ;;  %v3636_v35 = vld [vmem:[%s2968_s13 + $0x40] sm:$0xff] }
 0x191   : > { %v1125_v21 = vpack.c.bf16 %v1109_v34, %v1109_v34  ;;  %v3642_v34 = vld [vmem:[%s2973_s17 + $0x68] sm:$0xff] }
 0x192   : > { %1147 = vst.msk [vmem:[#allocation2 + $0x70] sm:$0xf] %vm1132_vm1, %v1130_v42 }
 0x193   : > { %1142 = vst.msk [vmem:[#allocation2 + $0x48] sm:$0xf] %vm1132_vm1, %v1125_v21 }
 0x196   : > { %1450 = vperm.xlu0 %2728, %v3584_v8   ;;  %v1083_v18 = vpop.permute.xlu1 %1082 }
 0x197   : > { %1400 = vperm.xlu2 %2727, %v3587_v4   ;;  %1395 = vperm.xlu1 %2729, %v3590_v36   ;;  %v1112_v61 = vmul.f32 %v1083_v18, %v1016_v9  ;;  %v1155_v45 = vpop.permute.xlu0 %1154  ;;  %v3597_v62 = vpop.permute.xlu2 %1170  ;;  %v3652_v18 = vld [vmem:[%s2968_s13 + $0x58] sm:$0xff] }
 0x199   : > { %v1128_v51 = vpack.c.bf16 %v1112_v61, %v1112_v61  ;;  %v4280_v61 = vld [vmem:[#allocation38_spill] sm:$0xff] }
 0x19b   : > { %1145 = vst.msk [vmem:[#allocation2 + $0x60] sm:$0xf] %vm1132_vm1, %v1128_v51  ;;  %v1214_v51 = vsub.f32 %v4280_v61, %v1155_v45  ;;  %v3671_v45 = vld [vmem:[%s2968_s13 + $0x20] sm:$0xff]  ;;  %v3674_v61 = vld [vmem:[%s2968_s13 + $0x18] sm:$0xff] }
 0x19e   : > { %1481 = vperm.xlu0 %2728, %v3601_v29   ;;  %v1098_v5 = vpop.permute.xlu1 %1097 }
 0x19f   : > { %1415 = vperm.xlu2 %2727, %v3604_v11   ;;  %1410 = vperm.xlu1 %2729, %v3607_v38   ;;  %v1115_v1 = vmul.f32 %v1098_v5, %v1019_v24  ;;  %v3614_v12 = vpop.permute.xlu0 %1174  ;;  %v3616_v52 = vpop.permute.xlu2 %1182  ;;  %v3656_v24 = vld [vmem:[%s2968_s13 + $0x8] sm:$0xff]  ;;  %v3659_v5 = vld [vmem:[%s2968_s13] sm:$0xff] }
 0x1a1   : > { %v1131_v17 = vpack.c.bf16 %v1115_v1, %v1115_v1 }
 0x1a3   : > { %1148 = vst.msk [vmem:[#allocation2 + $0x78] sm:$0xf] %vm1132_vm1, %v1131_v17 }
 0x1a6   : > { %1496 = vperm.xlu0 %2728, %v3620_v59  }
 0x1a7   : > { %1430 = vperm.xlu2 %2727, %v3623_v26   ;;  %1425 = vperm.xlu1 %2729, %v3626_v15   ;;  %v3631_v32 = vpop.permute.xlu0 %1186  ;;  %v3633_v20 = vpop.permute.xlu2 %1194 }
 0x1a8   : > { %v1159_v10 = vpop.permute.xlu1 %1158 }
 0x1a9   : > { %v1215_v55 = vsub.f32 %v4281_v16, %v1159_v10  ;;  %v3686_v10 = vld [vmem:[%s2968_s13 + $0x30] sm:$0xff] }
 0x1aa   : > { %4283 = vst [vmem:[#allocation11_spill] sm:$0xff] %v3686_v10 }
 0x1ae   : > { %1511 = vperm.xlu0 %2728, %v3636_v35  }
 0x1af   : > { %1445 = vperm.xlu2 %2727, %v3639_v23   ;;  %1440 = vperm.xlu1 %2729, %v3642_v34   ;;  %v3647_v42 = vpop.permute.xlu0 %1198  ;;  %v3649_v21 = vpop.permute.xlu2 %1206 }
 0x1b0   : > { %v1167_v9 = vpop.permute.xlu1 %1166 }
 0x1b1   : > { %v1217_v33 = vsub.f32 %v4282_v0, %v1167_v9  ;;  %v1218_v9 = vsub.f32 %v3401_v19, %v3597_v62  ;;  %v4284_v0 = vld [vmem:[#allocation40_spill] sm:$0xff]  ;;  %v3698_v62 = vld [vmem:[%s2968_s13 + $0x50] sm:$0xff] }
 0x1b6   : > { %1526 = vperm.xlu0 %2728, %v3652_v18  }
 0x1b7   : > { %1476 = vperm.xlu2 %2727, %v3656_v24   ;;  %1471 = vperm.xlu1 %2729, %v3659_v5   ;;  %v3664_v1 = vpop.permute.xlu0 %1210  ;;  %v1235_v17 = vpop.permute.xlu2 %1234 }
 0x1b8   : > { %v1294_v41 = vmul.f32 %v1235_v17, %v1214_v51  ;;  %v1179_v2 = vpop.permute.xlu1 %1178 }
 0x1b9   : > { %v1220_v16 = vsub.f32 %v4284_v0, %v1179_v2  ;;  %v3701_v2 = vld [vmem:[%s2968_s13 + $0x48] sm:$0xff] }
 0x1ba   : > { %v1310_v7 = vpack.c.bf16 %v1294_v41, %v1294_v41  ;;  %v4285_v0 = vld [vmem:[#allocation20_spill] sm:$0xff] }
 0x1bc   : > { %1326 = vst.msk [vmem:[#allocation2 + $0xc] sm:$0xf] %vm1132_vm1, %v1310_v7 }
 0x1be   : > { %1541 = vperm.xlu0 %2728, %v3667_v44  }
 0x1bf   : > { %1491 = vperm.xlu2 %2727, %v3671_v45   ;;  %1486 = vperm.xlu1 %2729, %v3674_v61   ;;  %v1239_v41 = vpop.permute.xlu0 %1238  ;;  %v1247_v51 = vpop.permute.xlu2 %1246 }
 0x1c0   : > { %v1295_v17 = vmul.f32 %v1239_v41, %v1215_v55  ;;  %v1297_v7 = vmul.f32 %v1247_v51, %v1217_v33  ;;  %v1191_v57 = vpop.permute.xlu1 %1190  ;;  %v4189_v55 = vmov 6  }
 0x1c1   : > { %v1223_v19 = vsub.f32 %v4285_v0, %v1191_v57  ;;  %v3714_v57 = vld [vmem:[%s2968_s13 + $0x68] sm:$0xff] }
 0x1c2   : > { %v1311_v28 = vpack.c.bf16 %v1295_v17, %v1295_v17  ;;  %v1313_v39 = vpack.c.bf16 %v1297_v7, %v1297_v7 }
 0x1c4   : > { %1327 = vst.msk [vmem:[#allocation2 + $0x14] sm:$0xf] %vm1132_vm1, %v1311_v28 }
 0x1c5   : > { %1329 = vst.msk [vmem:[#allocation2 + $0x24] sm:$0xf] %vm1132_vm1, %v1313_v39 }
 0x1c6   : > { %2731 = vset.pattern.permute.xlu0 %v4189_v55  ;;  %v1221_v55 = vsub.f32 %v3422_v47, %v3616_v52 }
 0x1c7   : > { %1506 = vperm.xlu2 %2727, %v3683_v22   ;;  %1501 = vperm.xlu1 %2729, %v3686_v10   ;;  %v1251_v33 = vpop.permute.xlu0 %1250  ;;  %v1259_v28 = vpop.permute.xlu2 %1258 }
 0x1c8   : > { %1603 = vperm.xlu0 %2731, %v3519_v43   ;;  %v1298_v41 = vmul.f32 %v1251_v33, %v1218_v9  ;;  %v1300_v39 = vmul.f32 %v1259_v28, %v1220_v16  ;;  %v1203_v51 = vpop.permute.xlu1 %1202  ;;  %v4286_v9 = vld [vmem:[#allocation25_spill] sm:$0xff] }
 0x1c9   : > { %v1213_v16 = vsub.f32 %v4286_v9, %v3559_v31  ;;  %v3717_v31 = vld [vmem:[%s2968_s13 + $0x60] sm:$0xff]  ;;  %v1224_v9 = vsub.f32 %v3438_v63, %v3633_v20  ;;  %v1226_v0 = vsub.f32 %v3405_v60, %v1203_v51 }
 0x1ca   : > { %v1314_v17 = vpack.c.bf16 %v1298_v41, %v1298_v41  ;;  %v1316_v7 = vpack.c.bf16 %v1300_v39, %v1300_v39 }
 0x1cc   : > { %1330 = vst.msk [vmem:[#allocation2 + $0x2c] sm:$0xf] %vm1132_vm1, %v1314_v17 }
 0x1cd   : > { %1332 = vst.msk [vmem:[#allocation2 + $0x3c] sm:$0xf] %vm1132_vm1, %v1316_v7 }
 0x1cf   : > { %1521 = vperm.xlu2 %2727, %v3698_v62   ;;  %1516 = vperm.xlu1 %2729, %v3701_v2   ;;  %v1263_v33 = vpop.permute.xlu0 %1262  ;;  %v1271_v28 = vpop.permute.xlu2 %1270 }
 0x1d0   : > { %1623 = vperm.xlu0 %2731, %v3532_v13   ;;  %v1301_v41 = vmul.f32 %v1263_v33, %v1221_v55  ;;  %v1303_v39 = vmul.f32 %v1271_v28, %v1223_v19  ;;  %v1231_v17 = vpop.permute.xlu1 %1230  ;;  %v1216_v19 = vsub.f32 %v3407_v3, %v3579_v27  ;;  %v1227_v27 = vsub.f32 %v3455_v48, %v3649_v21 }
 0x1d1   : > { %v1293_v7 = vmul.f32 %v1231_v17, %v1213_v16 }
 0x1d2   : > { %v1317_v52 = vpack.c.bf16 %v1301_v41, %v1301_v41  ;;  %v1319_v47 = vpack.c.bf16 %v1303_v39, %v1303_v39 }
 0x1d3   : > { %v1309_v10 = vpack.c.bf16 %v1293_v7, %v1293_v7 }
 0x1d4   : > { %1333 = vst.msk [vmem:[#allocation2 + $0x44] sm:$0xf] %vm1132_vm1, %v1317_v52 }
 0x1d5   : > { %1335 = vst.msk [vmem:[#allocation2 + $0x54] sm:$0xf] %vm1132_vm1, %v1319_v47 }
 0x1d6   : > { %1325 = vst.msk [vmem:[#allocation2 + $0x4] sm:$0xf] %vm1132_vm1, %v1309_v10  ;;  %v3731_v10 = vld [vmem:[%s2968_s13 + $0x78] sm:$0xff] }
 0x1d7   : > { %1536 = vperm.xlu2 %2727, %v3714_v57   ;;  %1531 = vperm.xlu1 %2729, %v3717_v31   ;;  %v1275_v55 = vpop.permute.xlu0 %1274  ;;  %v1283_v16 = vpop.permute.xlu2 %1282 }
 0x1d8   : > { %1635 = vperm.xlu0 %2731, %v3546_v56   ;;  %v1304_v47 = vmul.f32 %v1275_v55, %v1224_v9  ;;  %v1306_v33 = vmul.f32 %v1283_v16, %v1226_v0  ;;  %v1243_v28 = vpop.permute.xlu1 %1242  ;;  %v1219_v9 = vsub.f32 %v3420_v25, %v3614_v12  ;;  %v4287_v0 = vmov 6  }
 0x1d9   : > { %v1296_v20 = vmul.f32 %v1243_v28, %v1216_v19  ;;  %v1222_v12 = vsub.f32 %v3441_v40, %v3631_v32 }
 0x1da   : > { %v1320_v41 = vpack.c.bf16 %v1304_v47, %v1304_v47  ;;  %v1322_v51 = vpack.c.bf16 %v1306_v33, %v1306_v33 }
 0x1db   : > { %v1312_v39 = vpack.c.bf16 %v1296_v20, %v1296_v20 }
 0x1dc   : > { %1336 = vst.msk [vmem:[#allocation2 + $0x5c] sm:$0xf] %vm1132_vm1, %v1320_v41 }
 0x1dd   : > { %1338 = vst.msk [vmem:[#allocation2 + $0x6c] sm:$0xf] %vm1132_vm1, %v1322_v51  ;;  %v1225_v51 = vsub.f32 %v3457_v49, %v3647_v42 }
 0x1de   : > { %1328 = vst.msk [vmem:[#allocation2 + $0x1c] sm:$0xf] %vm1132_vm1, %v1312_v39 }
 0x1df   : > { %2730 = vset.pattern.permute.xlu2 %v4287_v0  ;;  %1546 = vperm.xlu1 %2729, %v3731_v10   ;;  %v1287_v17 = vpop.permute.xlu0 %1286 }
 0x1e0   : > { %1647 = vperm.xlu0 %2731, %v3564_v50   ;;  %v1307_v7 = vmul.f32 %v1287_v17, %v1227_v27  ;;  %1599 = vperm.xlu2 %2730, %v3552_v46   ;;  %v1255_v52 = vpop.permute.xlu1 %1254  ;;  %v1228_v17 = vsub.f32 %v3471_v37, %v3664_v1 }
 0x1e1   : > { %v1299_v19 = vmul.f32 %v1255_v52, %v1219_v9  ;;  %v3743_v55 = vpop.permute.xlu2 %1375 }
 0x1e2   : > { %v1323_v21 = vpack.c.bf16 %v1307_v7, %v1307_v7 }
 0x1e3   : > { %v1315_v16 = vpack.c.bf16 %v1299_v19, %v1299_v19 }
 0x1e4   : > { %1339 = vst.msk [vmem:[#allocation2 + $0x74] sm:$0xf] %vm1132_vm1, %v1323_v21 }
 0x1e5   : > { %1331 = vst.msk [vmem:[#allocation2 + $0x34] sm:$0xf] %vm1132_vm1, %v1315_v16 }
 0x1e7   : > { %2732 = vset.pattern.permute.xlu1 %v4287_v0 }
 0x1e8   : > { %1659 = vperm.xlu0 %2731, %v3584_v8   ;;  %1611 = vperm.xlu2 %2730, %v3569_v30   ;;  %v1267_v47 = vpop.permute.xlu1 %1266  ;;  %v1381_v33 = vpop.permute.xlu0 %1380 }
 0x1e9   : > { %1607 = vperm.xlu1 %2732, %v3572_v53   ;;  %v1302_v28 = vmul.f32 %v1267_v47, %v1222_v12  ;;  %v3753_v20 = vpop.permute.xlu2 %1390 }
 0x1eb   : > { %v1318_v41 = vpack.c.bf16 %v1302_v28, %v1302_v28 }
 0x1ed   : > { %1334 = vst.msk [vmem:[#allocation2 + $0x4c] sm:$0xf] %vm1132_vm1, %v1318_v41 }
 0x1f0   : > { %1687 = vperm.xlu0 %2731, %v3601_v29   ;;  %1619 = vperm.xlu2 %2730, %v3587_v4   ;;  %v1279_v32 = vpop.permute.xlu1 %1278  ;;  %v3760_v39 = vpop.permute.xlu0 %1405 }
 0x1f1   : > { %1615 = vperm.xlu1 %2732, %v3590_v36   ;;  %v1305_v27 = vmul.f32 %v1279_v32, %v1225_v51  ;;  %v1401_v9 = vpop.permute.xlu2 %1400  ;;  %v1454_v51 = vsub.f32 %v4259_v58, %v1381_v33  ;;  %v4200_v58 = vmov 3  }
 0x1f2   : > { %v1458_v33 = vsub.f32 %v4267_v6, %v1401_v9  ;;  %v4288_v9 = vld [vmem:[#allocation32_spill] sm:$0xff]  ;;  %v4290_v6 = vld [vmem:[#allocation11_spill] sm:$0xff] }
 0x1f3   : > { %v1321_v0 = vpack.c.bf16 %v1305_v27, %v1305_v27 }
 0x1f5   : > { %1337 = vst.msk [vmem:[#allocation2 + $0x64] sm:$0xf] %vm1132_vm1, %v1321_v0 }
 0x1f8   : > { %1699 = vperm.xlu0 %2731, %v3620_v59   ;;  %1631 = vperm.xlu2 %2730, %v3604_v11   ;;  %v1291_v42 = vpop.permute.xlu1 %1290  ;;  %v3768_v7 = vpop.permute.xlu0 %1420 }
 0x1f9   : > { %1627 = vperm.xlu1 %2732, %v3607_v38   ;;  %v1308_v52 = vmul.f32 %v1291_v42, %v1228_v17  ;;  %v1416_v19 = vpop.permute.xlu2 %1415 }
 0x1fb   : > { %v1324_v21 = vpack.c.bf16 %v1308_v52, %v1308_v52 }
 0x1fd   : > { %1340 = vst.msk [vmem:[#allocation2 + $0x7c] sm:$0xf] %vm1132_vm1, %v1324_v21 }
 0x200   : > { %1711 = vperm.xlu0 %2731, %v3636_v35   ;;  %1643 = vperm.xlu2 %2730, %v3623_v26   ;;  %v3774_v16 = vpop.permute.xlu0 %1435 }
 0x201   : > { %1639 = vperm.xlu1 %2732, %v3626_v15   ;;  %v1431_v1 = vpop.permute.xlu2 %1430  ;;  %v1386_v12 = vpop.permute.xlu1 %1385 }
 0x202   : > { %v1455_v32 = vsub.f32 %v4263_v54, %v1386_v12 }
 0x208   : > { %1723 = vperm.xlu0 %2731, %v3652_v18   ;;  %1655 = vperm.xlu2 %2730, %v3639_v23   ;;  %v3779_v47 = vpop.permute.xlu0 %1450 }
 0x209   : > { %1651 = vperm.xlu1 %2732, %v3642_v34   ;;  %v3782_v28 = vpop.permute.xlu2 %1445  ;;  %v1396_v41 = vpop.permute.xlu1 %1395 }
 0x20a   : > { %v1457_v12 = vsub.f32 %v4260_v14, %v1396_v41  ;;  %v1461_v41 = vsub.f32 %v4288_v9, %v1416_v19  ;;  %v4291_v19 = vld [vmem:[#allocation34_spill] sm:$0xff] }
 0x210   : > { %1735 = vperm.xlu0 %2731, %v3667_v44   ;;  %1683 = vperm.xlu2 %2730, %v3656_v24   ;;  %v1482_v27 = vpop.permute.xlu0 %1481 }
 0x211   : > { %1679 = vperm.xlu1 %2732, %v3659_v5   ;;  %v1551_v0 = vmul.f32 %v1482_v27, %v1455_v32  ;;  %v1477_v17 = vpop.permute.xlu2 %1476  ;;  %v1411_v42 = vpop.permute.xlu1 %1410 }
 0x212   : > { %v1550_v52 = vmul.f32 %v1477_v17, %v1454_v51 }
 0x213   : > { %v1567_v21 = vpack.c.bf16 %v1551_v0, %v1551_v0 }
 0x214   : > { %v1566_v37 = vpack.c.bf16 %v1550_v52, %v1550_v52 }
 0x215   : > { %1584 = vst.msk [vmem:[#allocation2 + $0x10] sm:$0xf] %vm1581_vm2, %v1567_v21  ;;  %v4289_v21 = vld [vmem:[#allocation21_spill] sm:$0xff] }
 0x216   : > { %1583 = vst.msk [vmem:[#allocation2 + $0x8] sm:$0xf] %vm1581_vm2, %v1566_v37 }
 0x218   : > { %2734 = vset.pattern.permute.xlu0 %v4200_v58  ;;  %1695 = vperm.xlu2 %2730, %v3671_v45   ;;  %v1497_v32 = vpop.permute.xlu0 %1496  ;;  %v1460_v58 = vsub.f32 %v4289_v21, %v1411_v42  ;;  %v4292_v42 = vld [vmem:[#allocation23_spill] sm:$0xff]  ;;  %v4293_v21 = vld [vmem:[#allocation24_spill] sm:$0xff] }
 0x219   : > { %1691 = vperm.xlu1 %2732, %v3674_v61   ;;  %1829 = vperm.xlu0 %2734, %v3519_v43   ;;  %v1554_v51 = vmul.f32 %v1497_v32, %v1458_v33  ;;  %v1492_v27 = vpop.permute.xlu2 %1491  ;;  %v1426_v0 = vpop.permute.xlu1 %1425 }
 0x21a   : > { %v1553_v17 = vmul.f32 %v1492_v27, %v1457_v12  ;;  %v1463_v9 = vsub.f32 %v4293_v21, %v1426_v0 }
 0x21b   : > { %v1570_v52 = vpack.c.bf16 %v1554_v51, %v1554_v51 }
 0x21c   : > { %v1569_v37 = vpack.c.bf16 %v1553_v17, %v1553_v17 }
 0x21d   : > { %1587 = vst.msk [vmem:[#allocation2 + $0x28] sm:$0xf] %vm1581_vm2, %v1570_v52  ;;  %v1464_v52 = vsub.f32 %v4291_v19, %v1431_v1 }
 0x21e   : > { %1586 = vst.msk [vmem:[#allocation2 + $0x20] sm:$0xf] %vm1581_vm2, %v1569_v37  ;;  %v1453_v37 = vsub.f32 %v4292_v42, %v3743_v55  ;;  %v4294_v55 = vld [vmem:[#allocation36_spill] sm:$0xff]  ;;  %v4205_v42 = vmov 7  }
 0x21f   : > { %v1467_v0 = vsub.f32 %v4294_v55, %v3782_v28 }
 0x220   : > { %1707 = vperm.xlu2 %2730, %v3683_v22   ;;  %v1512_v14 = vpop.permute.xlu0 %1511 }
 0x221   : > { %1703 = vperm.xlu1 %2732, %v4290_v6   ;;  %1854 = vperm.xlu0 %2734, %v3532_v13   ;;  %v1557_v33 = vmul.f32 %v1512_v14, %v1461_v41  ;;  %v1507_v32 = vpop.permute.xlu2 %1506  ;;  %v1441_v12 = vpop.permute.xlu1 %1440 }
 0x222   : > { %v1556_v51 = vmul.f32 %v1507_v32, %v1460_v58 }
 0x223   : > { %v1573_v27 = vpack.c.bf16 %v1557_v33, %v1557_v33 }
 0x224   : > { %v1572_v17 = vpack.c.bf16 %v1556_v51, %v1556_v51 }
 0x225   : > { %1590 = vst.msk [vmem:[#allocation2 + $0x40] sm:$0xf] %vm1581_vm2, %v1573_v27 }
 0x226   : > { %1589 = vst.msk [vmem:[#allocation2 + $0x38] sm:$0xf] %vm1581_vm2, %v1572_v17  ;;  %v4295_v17 = vld [vmem:[#allocation29_spill] sm:$0xff] }
 0x227   : > { %v1456_v21 = vsub.f32 %v4295_v17, %v3753_v20  ;;  %v4297_v20 = vld [vmem:[#allocation30_spill] sm:$0xff] }
 0x228   : > { %1719 = vperm.xlu2 %2730, %v3698_v62   ;;  %v1527_v54 = vpop.permute.xlu0 %1526 }
 0x229   : > { %1715 = vperm.xlu1 %2732, %v3701_v2   ;;  %1869 = vperm.xlu0 %2734, %v3546_v56   ;;  %v1560_v58 = vmul.f32 %v1527_v54, %v1464_v52  ;;  %v1522_v14 = vpop.permute.xlu2 %1521  ;;  %v1472_v41 = vpop.permute.xlu1 %1471  ;;  %v4296_v54 = vld [vmem:[#allocation27_spill] sm:$0xff] }
 0x22a   : > { %v1559_v33 = vmul.f32 %v1522_v14, %v1463_v9  ;;  %v1549_v32 = vmul.f32 %v1472_v41, %v1453_v37  ;;  %v1466_v52 = vsub.f32 %v4296_v54, %v1441_v12  ;;  %v1459_v12 = vsub.f32 %v4297_v20, %v3760_v39  ;;  %v4304_v54 = vld [vmem:[#allocation26_spill] sm:$0xff] }
 0x22b   : > { %v1576_v51 = vpack.c.bf16 %v1560_v58, %v1560_v58 }
 0x22c   : > { %v1575_v27 = vpack.c.bf16 %v1559_v33, %v1559_v33  ;;  %v1565_v1 = vpack.c.bf16 %v1549_v32, %v1549_v32 }
 0x22d   : > { %1593 = vst.msk [vmem:[#allocation2 + $0x58] sm:$0xf] %vm1581_vm2, %v1576_v51 }
 0x22e   : > { %1592 = vst.msk [vmem:[#allocation2 + $0x50] sm:$0xf] %vm1581_vm2, %v1575_v27  ;;  %v4298_v27 = vmov 3  }
 0x22f   : > { %1582 = vst.msk [vmem:[#allocation2] sm:$0xf] %vm1581_vm2, %v1565_v1 }
 0x230   : > { %1731 = vperm.xlu2 %2730, %v3714_v57   ;;  %v1542_v9 = vpop.permute.xlu0 %1541 }
 0x231   : > { %1727 = vperm.xlu1 %2732, %v3717_v31   ;;  %1884 = vperm.xlu0 %2734, %v3564_v50   ;;  %v1563_v37 = vmul.f32 %v1542_v9, %v1467_v0  ;;  %v1537_v58 = vpop.permute.xlu2 %1536  ;;  %v1487_v14 = vpop.permute.xlu1 %1486 }
 0x232   : > { %v1562_v41 = vmul.f32 %v1537_v58, %v1466_v52  ;;  %v1552_v33 = vmul.f32 %v1487_v14, %v1456_v21 }
 0x233   : > { %v1579_v28 = vpack.c.bf16 %v1563_v37, %v1563_v37  ;;  %v4299_v37 = vld [vmem:[#allocation33_spill] sm:$0xff] }
 0x234   : > { %v1578_v32 = vpack.c.bf16 %v1562_v41, %v1562_v41  ;;  %v1568_v51 = vpack.c.bf16 %v1552_v33, %v1552_v33  ;;  %v1462_v58 = vsub.f32 %v4299_v37, %v3768_v7  ;;  %v4303_v37 = vld [vmem:[#allocation38_spill] sm:$0xff] }
 0x235   : > { %1596 = vst.msk [vmem:[#allocation2 + $0x70] sm:$0xf] %vm1581_vm2, %v1579_v28 }
 0x236   : > { %1595 = vst.msk [vmem:[#allocation2 + $0x68] sm:$0xf] %vm1581_vm2, %v1578_v32  ;;  %v4300_v32 = vld [vmem:[#allocation35_spill] sm:$0xff] }
 0x237   : > { %1585 = vst.msk [vmem:[#allocation2 + $0x18] sm:$0xf] %vm1581_vm2, %v1568_v51  ;;  %v1465_v7 = vsub.f32 %v4300_v32, %v3774_v16 }
 0x238   : > { %2733 = vset.pattern.permute.xlu2 %v4298_v27 }
 0x239   : > { %1739 = vperm.xlu1 %2732, %v3731_v10   ;;  %1899 = vperm.xlu0 %2734, %v3584_v8   ;;  %v1502_v1 = vpop.permute.xlu1 %1501 }
 0x23a   : > { %1824 = vperm.xlu2 %2733, %v3552_v46   ;;  %v1555_v21 = vmul.f32 %v1502_v1, %v1459_v12  ;;  %v1604_v0 = vpop.permute.xlu0 %1603  ;;  %v3833_v52 = vpop.permute.xlu2 %1599 }
 0x23b   : > { %v1663_v20 = vsub.f32 %v4303_v37, %v1604_v0 }
 0x23c   : > { %v1571_v9 = vpack.c.bf16 %v1555_v21, %v1555_v21 }
 0x23e   : > { %1588 = vst.msk [vmem:[#allocation2 + $0x30] sm:$0xf] %vm1581_vm2, %v1571_v9  ;;  %v4301_v9 = vld [vmem:[#allocation37_spill] sm:$0xff] }
 0x241   : > { %2735 = vset.pattern.permute.xlu1 %v4298_v27  ;;  %1930 = vperm.xlu0 %2734, %v3601_v29   ;;  %v1517_v39 = vpop.permute.xlu1 %1516 }
 0x242   : > { %1839 = vperm.xlu2 %2733, %v3569_v30   ;;  %1834 = vperm.xlu1 %2735, %v3572_v53   ;;  %v1558_v14 = vmul.f32 %v1517_v39, %v1462_v58  ;;  %v3842_v41 = vpop.permute.xlu0 %1623  ;;  %v3844_v33 = vpop.permute.xlu2 %1611  ;;  %v1468_v58 = vsub.f32 %v4301_v9, %v3779_v47 }
 0x244   : > { %v1574_v28 = vpack.c.bf16 %v1558_v14, %v1558_v14 }
 0x246   : > { %1591 = vst.msk [vmem:[#allocation2 + $0x48] sm:$0xf] %vm1581_vm2, %v1574_v28 }
 0x249   : > { %1945 = vperm.xlu0 %2734, %v3620_v59   ;;  %v1532_v51 = vpop.permute.xlu1 %1531 }
 0x24a   : > { %1849 = vperm.xlu2 %2733, %v3587_v4   ;;  %1844 = vperm.xlu1 %2735, %v3590_v36   ;;  %v1561_v12 = vmul.f32 %v1532_v51, %v1465_v7  ;;  %v3852_v27 = vpop.permute.xlu0 %1635  ;;  %v1620_v1 = vpop.permute.xlu2 %1619 }
 0x24b   : > { %v1667_v17 = vsub.f32 %v4304_v54, %v1620_v1 }
 0x24c   : > { %v1577_v21 = vpack.c.bf16 %v1561_v12, %v1561_v12 }
 0x24e   : > { %1594 = vst.msk [vmem:[#allocation2 + $0x60] sm:$0xf] %vm1581_vm2, %v1577_v21  ;;  %v4302_v21 = vld [vmem:[#allocation22_spill] sm:$0xff] }
 0x251   : > { %1960 = vperm.xlu0 %2734, %v3636_v35   ;;  %v1547_v16 = vpop.permute.xlu1 %1546 }
 0x252   : > { %1864 = vperm.xlu2 %2733, %v3604_v11   ;;  %1859 = vperm.xlu1 %2735, %v3607_v38   ;;  %v1564_v39 = vmul.f32 %v1547_v16, %v1468_v58  ;;  %v3860_v14 = vpop.permute.xlu0 %1647  ;;  %v1632_v28 = vpop.permute.xlu2 %1631 }
 0x254   : > { %v1580_v7 = vpack.c.bf16 %v1564_v39, %v1564_v39 }
 0x256   : > { %1597 = vst.msk [vmem:[#allocation2 + $0x78] sm:$0xf] %vm1581_vm2, %v1580_v7 }
 0x259   : > { %1975 = vperm.xlu0 %2734, %v3652_v18  }
 0x25a   : > { %1879 = vperm.xlu2 %2733, %v3623_v26   ;;  %1874 = vperm.xlu1 %2735, %v3626_v15   ;;  %v3866_v47 = vpop.permute.xlu0 %1659  ;;  %v1644_v51 = vpop.permute.xlu2 %1643 }
 0x25b   : > { %v1608_v12 = vpop.permute.xlu1 %1607 }
 0x25c   : > { %v1664_v9 = vsub.f32 %v4302_v21, %v1608_v12 }
 0x261   : > { %1990 = vperm.xlu0 %2734, %v3667_v44  }
 0x262   : > { %1894 = vperm.xlu2 %2733, %v3639_v23   ;;  %1889 = vperm.xlu1 %2735, %v3642_v34   ;;  %v1688_v58 = vpop.permute.xlu0 %1687  ;;  %v1656_v16 = vpop.permute.xlu2 %1655 }
 0x263   : > { %v1744_v39 = vmul.f32 %v1688_v58, %v1664_v9  ;;  %v1616_v7 = vpop.permute.xlu1 %1615 }
 0x265   : > { %v1760_v32 = vpack.c.bf16 %v1744_v39, %v1744_v39 }
 0x267   : > { %1776 = vst.msk [vmem:[#allocation2 + $0x14] sm:$0xf] %vm1581_vm2, %v1760_v32  ;;  %v4305_v32 = vld [vmem:[#allocation15_spill] sm:$0xff] }
 0x268   : > { %v1670_v1 = vsub.f32 %v4305_v32, %v1632_v28  ;;  %v4307_v28 = vld [vmem:[#allocation40_spill] sm:$0xff] }
 0x269   : > { %2737 = vset.pattern.permute.xlu0 %v4205_v42  ;;  %v4306_v42 = vld [vmem:[#allocation39_spill] sm:$0xff] }
 0x26a   : > { %1925 = vperm.xlu2 %2733, %v3656_v24   ;;  %1920 = vperm.xlu1 %2735, %v3659_v5   ;;  %v1700_v12 = vpop.permute.xlu0 %1699  ;;  %v1684_v21 = vpop.permute.xlu2 %1683  ;;  %v1666_v37 = vsub.f32 %v4306_v42, %v1616_v7 }
 0x26b   : > { %2052 = vperm.xlu0 %2737, %v3519_v43   ;;  %v1747_v9 = vmul.f32 %v1700_v12, %v1667_v17  ;;  %v1743_v58 = vmul.f32 %v1684_v21, %v1663_v20  ;;  %v1628_v39 = vpop.permute.xlu1 %1627 }
 0x26c   : > { %v1669_v7 = vsub.f32 %v4307_v28, %v1628_v39  ;;  %v4308_v39 = vld [vmem:[#allocation20_spill] sm:$0xff] }
 0x26d   : > { %v1763_v55 = vpack.c.bf16 %v1747_v9, %v1747_v9  ;;  %v1759_v0 = vpack.c.bf16 %v1743_v58, %v1743_v58 }
 0x26f   : > { %1779 = vst.msk [vmem:[#allocation2 + $0x2c] sm:$0xf] %vm1581_vm2, %v1763_v55  ;;  %v1673_v55 = vsub.f32 %v3438_v63, %v1644_v51  ;;  %v1676_v51 = vsub.f32 %v3455_v48, %v1656_v16 }
 0x270   : > { %1775 = vst.msk [vmem:[#allocation2 + $0xc] sm:$0xf] %vm1581_vm2, %v1759_v0 }
 0x272   : > { %1940 = vperm.xlu2 %2733, %v3671_v45   ;;  %1935 = vperm.xlu1 %2735, %v3674_v61   ;;  %v1712_v54 = vpop.permute.xlu0 %1711  ;;  %v1696_v19 = vpop.permute.xlu2 %1695 }
 0x273   : > { %2072 = vperm.xlu0 %2737, %v3532_v13   ;;  %v1750_v43 = vmul.f32 %v1712_v54, %v1670_v1  ;;  %v1746_v17 = vmul.f32 %v1696_v19, %v1666_v37  ;;  %v1640_v20 = vpop.permute.xlu1 %1639 }
 0x274   : > { %v1672_v1 = vsub.f32 %v4308_v39, %v1640_v20  ;;  %v1665_v20 = vsub.f32 %v3407_v3, %v3844_v33  ;;  %v1668_v33 = vsub.f32 %v3420_v25, %v3842_v41  ;;  %v1671_v41 = vsub.f32 %v3441_v40, %v3852_v27 }
 0x275   : > { %v1766_v21 = vpack.c.bf16 %v1750_v43, %v1750_v43  ;;  %v1762_v12 = vpack.c.bf16 %v1746_v17, %v1746_v17  ;;  %v4309_v43 = vld [vmem:[#allocation25_spill] sm:$0xff]  ;;  %v1674_v27 = vsub.f32 %v3457_v49, %v3860_v14 }
 0x276   : > { %v1662_v17 = vsub.f32 %v4309_v43, %v3833_v52 }
 0x277   : > { %1782 = vst.msk [vmem:[#allocation2 + $0x44] sm:$0xf] %vm1581_vm2, %v1766_v21 }
 0x278   : > { %1778 = vst.msk [vmem:[#allocation2 + $0x24] sm:$0xf] %vm1581_vm2, %v1762_v12 }
 0x27a   : > { %1955 = vperm.xlu2 %2733, %v3683_v22   ;;  %1950 = vperm.xlu1 %2735, %v4290_v6   ;;  %v1724_v9 = vpop.permute.xlu0 %1723  ;;  %v1708_v58 = vpop.permute.xlu2 %1707 }
 0x27b   : > { %2084 = vperm.xlu0 %2737, %v3546_v56   ;;  %v1753_v13 = vmul.f32 %v1724_v9, %v1673_v55  ;;  %v1749_v19 = vmul.f32 %v1708_v58, %v1669_v7  ;;  %v1652_v54 = vpop.permute.xlu1 %1651 }
 0x27c   : > { %v1675_v52 = vsub.f32 %v3405_v60, %v1652_v54  ;;  %v4310_v54 = vmov 7  }
 0x27d   : > { %v1769_v37 = vpack.c.bf16 %v1753_v13, %v1753_v13  ;;  %v1765_v0 = vpack.c.bf16 %v1749_v19, %v1749_v19 }
 0x27f   : > { %1785 = vst.msk [vmem:[#allocation2 + $0x5c] sm:$0xf] %vm1581_vm2, %v1769_v37 }
 0x280   : > { %1781 = vst.msk [vmem:[#allocation2 + $0x3c] sm:$0xf] %vm1581_vm2, %v1765_v0 }
 0x282   : > { %1970 = vperm.xlu2 %2733, %v3698_v62   ;;  %1965 = vperm.xlu1 %2735, %v3701_v2   ;;  %v1736_v56 = vpop.permute.xlu0 %1735  ;;  %v1720_v21 = vpop.permute.xlu2 %1719 }
 0x283   : > { %2096 = vperm.xlu0 %2737, %v3564_v50   ;;  %v1756_v12 = vmul.f32 %v1736_v56, %v1676_v51  ;;  %v1752_v55 = vmul.f32 %v1720_v21, %v1672_v1  ;;  %v1680_v7 = vpop.permute.xlu1 %1679 }
 0x284   : > { %v1742_v9 = vmul.f32 %v1680_v7, %v1662_v17 }
 0x285   : > { %v1772_v58 = vpack.c.bf16 %v1756_v12, %v1756_v12  ;;  %v1768_v13 = vpack.c.bf16 %v1752_v55, %v1752_v55 }
 0x286   : > { %v1758_v16 = vpack.c.bf16 %v1742_v9, %v1742_v9 }
 0x287   : > { %1788 = vst.msk [vmem:[#allocation2 + $0x74] sm:$0xf] %vm1581_vm2, %v1772_v58 }
 0x288   : > { %1784 = vst.msk [vmem:[#allocation2 + $0x54] sm:$0xf] %vm1581_vm2, %v1768_v13 }
 0x289   : > { %1774 = vst.msk [vmem:[#allocation2 + $0x4] sm:$0xf] %vm1581_vm2, %v1758_v16 }
 0x28a   : > { %1985 = vperm.xlu2 %2733, %v3714_v57   ;;  %1980 = vperm.xlu1 %2735, %v3717_v31   ;;  %v1732_v50 = vpop.permute.xlu2 %1731 }
 0x28b   : > { %2108 = vperm.xlu0 %2737, %v3584_v8   ;;  %v1755_v19 = vmul.f32 %v1732_v50, %v1675_v52  ;;  %v1692_v37 = vpop.permute.xlu1 %1691  ;;  %v3911_v0 = vpop.permute.xlu0 %1829  ;;  %v4311_v52 = vld [vmem:[#allocation17_spill] sm:$0xff] }
 0x28c   : > { %v1745_v51 = vmul.f32 %v1692_v37, %v1665_v20  ;;  %v1677_v20 = vsub.f32 %v4311_v52, %v3866_v47 }
 0x28d   : > { %v1771_v1 = vpack.c.bf16 %v1755_v19, %v1755_v19 }
 0x28e   : > { %v1761_v17 = vpack.c.bf16 %v1745_v51, %v1745_v51 }
 0x28f   : > { %1787 = vst.msk [vmem:[#allocation2 + $0x6c] sm:$0xf] %vm1581_vm2, %v1771_v1 }
 0x290   : > { %1777 = vst.msk [vmem:[#allocation2 + $0x1c] sm:$0xf] %vm1581_vm2, %v1761_v17 }
 0x292   : > { %2736 = vset.pattern.permute.xlu2 %v4310_v54  ;;  %1995 = vperm.xlu1 %2735, %v3731_v10  }
 0x293   : > { %2136 = vperm.xlu0 %2737, %v3601_v29   ;;  %2048 = vperm.xlu2 %2736, %v3552_v46   ;;  %v1704_v8 = vpop.permute.xlu1 %1703  ;;  %v3921_v56 = vpop.permute.xlu0 %1854 }
 0x294   : > { %v1748_v21 = vmul.f32 %v1704_v8, %v1668_v33  ;;  %v3923_v12 = vpop.permute.xlu2 %1824  ;;  %v4314_v8 = vld [vmem:[#allocation18_spill] sm:$0xff] }
 0x296   : > { %v1764_v55 = vpack.c.bf16 %v1748_v21, %v1748_v21  ;;  %v1903_v21 = vsub.f32 %v4314_v8, %v3911_v0  ;;  %v4317_v0 = vld [vmem:[#allocation19_spill] sm:$0xff] }
 0x298   : > { %1780 = vst.msk [vmem:[#allocation2 + $0x34] sm:$0xf] %vm1581_vm2, %v1764_v55  ;;  %v4315_v55 = vld [vmem:[#allocation32_spill] sm:$0xff] }
 0x29a   : > { %2738 = vset.pattern.permute.xlu1 %v4310_v54 }
 0x29b   : > { %2148 = vperm.xlu0 %2737, %v3620_v59   ;;  %2060 = vperm.xlu2 %2736, %v3569_v30   ;;  %v1716_v29 = vpop.permute.xlu1 %1715  ;;  %v3931_v46 = vpop.permute.xlu0 %1869 }
 0x29c   : > { %2056 = vperm.xlu1 %2738, %v3572_v53   ;;  %v1751_v7 = vmul.f32 %v1716_v29, %v1671_v41  ;;  %v3934_v9 = vpop.permute.xlu2 %1839 }
 0x29e   : > { %v1767_v58 = vpack.c.bf16 %v1751_v7, %v1751_v7 }
 0x2a0   : > { %1783 = vst.msk [vmem:[#allocation2 + $0x4c] sm:$0xf] %vm1581_vm2, %v1767_v58 }
 0x2a3   : > { %2160 = vperm.xlu0 %2737, %v3636_v35   ;;  %2068 = vperm.xlu2 %2736, %v3587_v4   ;;  %v1728_v59 = vpop.permute.xlu1 %1727  ;;  %v3941_v30 = vpop.permute.xlu0 %1884 }
 0x2a4   : > { %2064 = vperm.xlu1 %2738, %v3590_v36   ;;  %v1754_v13 = vmul.f32 %v1728_v59, %v1674_v27  ;;  %v1850_v53 = vpop.permute.xlu2 %1849 }
 0x2a6   : > { %v1770_v16 = vpack.c.bf16 %v1754_v13, %v1754_v13  ;;  %v4316_v13 = vld [vmem:[#allocation34_spill] sm:$0xff] }
 0x2a8   : > { %1786 = vst.msk [vmem:[#allocation2 + $0x64] sm:$0xf] %vm1581_vm2, %v1770_v16 }
 0x2ab   : > { %2172 = vperm.xlu0 %2737, %v3652_v18   ;;  %2080 = vperm.xlu2 %2736, %v3604_v11   ;;  %v1740_v35 = vpop.permute.xlu1 %1739  ;;  %v3949_v14 = vpop.permute.xlu0 %1899  ;;  %v4312_v11 = vld [vmem:[#allocation28_spill] sm:$0xff] }
 0x2ac   : > { %2076 = vperm.xlu1 %2738, %v3607_v38   ;;  %v1757_v4 = vmul.f32 %v1740_v35, %v1677_v20  ;;  %v1865_v50 = vpop.permute.xlu2 %1864  ;;  %v4313_v38 = vld [vmem:[#allocation31_spill] sm:$0xff] }
 0x2ad   : > { %v1907_v17 = vsub.f32 %v4313_v38, %v1850_v53  ;;  %v1910_v41 = vsub.f32 %v4315_v55, %v1865_v50 }
 0x2ae   : > { %v1773_v36 = vpack.c.bf16 %v1757_v4, %v1757_v4 }
 0x2b0   : > { %1789 = vst.msk [vmem:[#allocation2 + $0x7c] sm:$0xf] %vm1581_vm2, %v1773_v36 }
 0x2b3   : > { %2184 = vperm.xlu0 %2737, %v3667_v44   ;;  %2092 = vperm.xlu2 %2736, %v3623_v26   ;;  %v1931_v19 = vpop.permute.xlu0 %1930 }
 0x2b4   : > { %2088 = vperm.xlu1 %2738, %v3626_v15   ;;  %v1880_v18 = vpop.permute.xlu2 %1879  ;;  %v1835_v47 = vpop.permute.xlu1 %1834 }
 0x2b5   : > { %v1904_v37 = vsub.f32 %v4312_v11, %v1835_v47  ;;  %v1913_v53 = vsub.f32 %v4316_v13, %v1880_v18  ;;  %v4319_v18 = vld [vmem:[#allocation21_spill] sm:$0xff] }
 0x2b7   : > { %v2000_v51 = vmul.f32 %v1931_v19, %v1904_v37  ;;  %v4318_v19 = vld [vmem:[#allocation36_spill] sm:$0xff] }
 0x2b9   : > { %v2016_v1 = vpack.c.bf16 %v2000_v51, %v2000_v51 }
 0x2bb   : > { %2033 = vst.msk [vmem:[#allocation2 + $0x10] sm:$0xf] %vm2030_vm3, %v2016_v1  ;;  %2104 = vperm.xlu2 %2736, %v3639_v23   ;;  %v1946_v33 = vpop.permute.xlu0 %1945 }
 0x2bc   : > { %2100 = vperm.xlu1 %2738, %v3642_v34   ;;  %v2003_v44 = vmul.f32 %v1946_v33, %v1907_v17  ;;  %v1895_v26 = vpop.permute.xlu2 %1894  ;;  %v1845_v54 = vpop.permute.xlu1 %1844  ;;  %v4320_v33 = vld [vmem:[#allocation23_spill] sm:$0xff] }
 0x2bd   : > { %v1906_v16 = vsub.f32 %v4317_v0, %v1845_v54  ;;  %v1916_v47 = vsub.f32 %v4318_v19, %v1895_v26  ;;  %v4321_v26 = vld [vmem:[#allocation24_spill] sm:$0xff] }
 0x2be   : > { %v2019_v15 = vpack.c.bf16 %v2003_v44, %v2003_v44  ;;  %v1902_v44 = vsub.f32 %v4320_v33, %v3923_v12  ;;  %v4322_v12 = vld [vmem:[#allocation29_spill] sm:$0xff] }
 0x2c0   : > { %2036 = vst.msk [vmem:[#allocation2 + $0x28] sm:$0xf] %vm2030_vm3, %v2019_v15 }
 0x2c3   : > { %2132 = vperm.xlu2 %2736, %v3656_v24   ;;  %v1961_v29 = vpop.permute.xlu0 %1960 }
 0x2c4   : > { %2128 = vperm.xlu1 %2738, %v3659_v5   ;;  %v2006_v23 = vmul.f32 %v1961_v29, %v1910_v41  ;;  %v1926_v7 = vpop.permute.xlu2 %1925  ;;  %v1860_v58 = vpop.permute.xlu1 %1859  ;;  %v1905_v29 = vsub.f32 %v4322_v12, %v3934_v9  ;;  %v4324_v9 = vld [vmem:[#allocation30_spill] sm:$0xff] }
 0x2c5   : > { %v1999_v34 = vmul.f32 %v1926_v7, %v1903_v21  ;;  %v1909_v11 = vsub.f32 %v4319_v18, %v1860_v58 }
 0x2c6   : > { %v2022_v27 = vpack.c.bf16 %v2006_v23, %v2006_v23  ;;  %v4323_v23 = vld [vmem:[#allocation27_spill] sm:$0xff] }
 0x2c7   : > { %v2015_v59 = vpack.c.bf16 %v1999_v34, %v1999_v34 }
 0x2c8   : > { %2039 = vst.msk [vmem:[#allocation2 + $0x40] sm:$0xf] %vm2030_vm3, %v2022_v27 }
 0x2c9   : > { %2032 = vst.msk [vmem:[#allocation2 + $0x8] sm:$0xf] %vm2030_vm3, %v2015_v59 }
 0x2cb   : > { %2144 = vperm.xlu2 %2736, %v3671_v45   ;;  %v1976_v24 = vpop.permute.xlu0 %1975 }
 0x2cc   : > { %2140 = vperm.xlu1 %2738, %v3674_v61   ;;  %v2009_v5 = vmul.f32 %v1976_v24, %v1913_v53  ;;  %v1941_v20 = vpop.permute.xlu2 %1940  ;;  %v1875_v35 = vpop.permute.xlu1 %1874  ;;  %v1908_v53 = vsub.f32 %v4324_v9, %v3921_v56 }
 0x2cd   : > { %v2002_v4 = vmul.f32 %v1941_v20, %v1906_v16  ;;  %v1912_v54 = vsub.f32 %v4321_v26, %v1875_v35 }
 0x2ce   : > { %v2025_v50 = vpack.c.bf16 %v2009_v5, %v2009_v5  ;;  %v4325_v5 = vld [vmem:[#allocation33_spill] sm:$0xff] }
 0x2cf   : > { %v2018_v36 = vpack.c.bf16 %v2002_v4, %v2002_v4  ;;  %v1911_v20 = vsub.f32 %v4325_v5, %v3931_v46  ;;  %v4327_v46 = vld [vmem:[#allocation37_spill] sm:$0xff] }
 0x2d0   : > { %2042 = vst.msk [vmem:[#allocation2 + $0x58] sm:$0xf] %vm2030_vm3, %v2025_v50 }
 0x2d1   : > { %2035 = vst.msk [vmem:[#allocation2 + $0x20] sm:$0xf] %vm2030_vm3, %v2018_v36 }
 0x2d3   : > { %2156 = vperm.xlu2 %2736, %v3683_v22   ;;  %v1991_v45 = vpop.permute.xlu0 %1990 }
 0x2d4   : > { %2152 = vperm.xlu1 %2738, %v4290_v6   ;;  %v2012_v61 = vmul.f32 %v1991_v45, %v1916_v47  ;;  %v1956_v37 = vpop.permute.xlu2 %1955  ;;  %v1890_v51 = vpop.permute.xlu1 %1889 }
 0x2d5   : > { %v2005_v1 = vmul.f32 %v1956_v37, %v1909_v11  ;;  %v1915_v7 = vsub.f32 %v4323_v23, %v1890_v51  ;;  %v1917_v37 = vsub.f32 %v4327_v46, %v3949_v14 }
 0x2d6   : > { %v2028_v38 = vpack.c.bf16 %v2012_v61, %v2012_v61 }
 0x2d7   : > { %v2021_v17 = vpack.c.bf16 %v2005_v1, %v2005_v1 }
 0x2d8   : > { %2045 = vst.msk [vmem:[#allocation2 + $0x70] sm:$0xf] %vm2030_vm3, %v2028_v38 }
 0x2d9   : > { %2038 = vst.msk [vmem:[#allocation2 + $0x38] sm:$0xf] %vm2030_vm3, %v2021_v17 }
 0x2db   : > { %2168 = vperm.xlu2 %2736, %v3698_v62  }
 0x2dc   : > { %2164 = vperm.xlu1 %2738, %v3701_v2   ;;  %v1971_v6 = vpop.permute.xlu2 %1970  ;;  %v1921_v22 = vpop.permute.xlu1 %1920 }
 0x2dd   : > { %v2008_v15 = vmul.f32 %v1971_v6, %v1912_v54  ;;  %v1998_v8 = vmul.f32 %v1921_v22, %v1902_v44  ;;  %v3986_v21 = vpop.permute.xlu0 %2052  ;;  %v4328_v44 = vld [vmem:[#allocation26_spill] sm:$0xff] }
 0x2df   : > { %v2024_v55 = vpack.c.bf16 %v2008_v15, %v2008_v15  ;;  %v2014_v41 = vpack.c.bf16 %v1998_v8, %v1998_v8  ;;  %v4329_v15 = vld [vmem:[#allocation22_spill] sm:$0xff] }
 0x2e1   : > { %2041 = vst.msk [vmem:[#allocation2 + $0x50] sm:$0xf] %vm2030_vm3, %v2024_v55 }
 0x2e2   : > { %2031 = vst.msk [vmem:[#allocation2] sm:$0xf] %vm2030_vm3, %v2014_v41 }
 0x2e3   : > { %2180 = vperm.xlu2 %2736, %v3714_v57  }
 0x2e4   : > { %2176 = vperm.xlu1 %2738, %v3717_v31   ;;  %v1986_v62 = vpop.permute.xlu2 %1985  ;;  %v1936_v2 = vpop.permute.xlu1 %1935 }
 0x2e5   : > { %v2011_v58 = vmul.f32 %v1986_v62, %v1915_v7  ;;  %v2001_v34 = vmul.f32 %v1936_v2, %v1905_v29  ;;  %v3995_v27 = vpop.permute.xlu0 %2072 }
 0x2e7   : > { %v2027_v59 = vpack.c.bf16 %v2011_v58, %v2011_v58  ;;  %v2017_v13 = vpack.c.bf16 %v2001_v34, %v2001_v34  ;;  %v4330_v58 = vld [vmem:[#allocation38_spill] sm:$0xff] }
 0x2e8   : > { %v2112_v34 = vsub.f32 %v4330_v58, %v3986_v21 }
 0x2e9   : > { %2044 = vst.msk [vmem:[#allocation2 + $0x68] sm:$0xf] %vm2030_vm3, %v2027_v59 }
 0x2ea   : > { %2034 = vst.msk [vmem:[#allocation2 + $0x18] sm:$0xf] %vm2030_vm3, %v2017_v13 }
 0x2ec   : > { %2188 = vperm.xlu1 %2738, %v3731_v10   ;;  %v1951_v57 = vpop.permute.xlu1 %1950  ;;  %v4326_v10 = vld [vmem:[#allocation35_spill] sm:$0xff] }
 0x2ed   : > { %v2004_v0 = vmul.f32 %v1951_v57, %v1908_v53  ;;  %v4002_v31 = vpop.permute.xlu0 %2084  ;;  %v4004_v16 = vpop.permute.xlu2 %2048  ;;  %v1914_v19 = vsub.f32 %v4326_v10, %v3941_v30 }
 0x2ef   : > { %v2020_v24 = vpack.c.bf16 %v2004_v0, %v2004_v0 }
 0x2f1   : > { %2037 = vst.msk [vmem:[#allocation2 + $0x30] sm:$0xf] %vm2030_vm3, %v2020_v24 }
 0x2f4   : > { %v1966_v35 = vpop.permute.xlu1 %1965 }
 0x2f5   : > { %v2007_v4 = vmul.f32 %v1966_v35, %v1911_v20  ;;  %v4009_v50 = vpop.permute.xlu0 %2096  ;;  %v4011_v36 = vpop.permute.xlu2 %2060 }
 0x2f7   : > { %v2023_v56 = vpack.c.bf16 %v2007_v4, %v2007_v4 }
 0x2f9   : > { %2040 = vst.msk [vmem:[#allocation2 + $0x48] sm:$0xf] %vm2030_vm3, %v2023_v56 }
 0x2fc   : > { %v1981_v47 = vpop.permute.xlu1 %1980 }
 0x2fd   : > { %v2010_v18 = vmul.f32 %v1981_v47, %v1914_v19  ;;  %v4016_v11 = vpop.permute.xlu0 %2108  ;;  %v2069_v45 = vpop.permute.xlu2 %2068 }
 0x2fe   : > { %v2116_v30 = vsub.f32 %v4328_v44, %v2069_v45  ;;  %v2114_v44 = vsub.f32 %v3407_v3, %v4011_v36  ;;  %v2120_v3 = vsub.f32 %v3441_v40, %v4002_v31 }
 0x2ff   : > { %v2026_v61 = vpack.c.bf16 %v2010_v18, %v2010_v18 }
 0x301   : > { %2043 = vst.msk [vmem:[#allocation2 + $0x60] sm:$0xf] %vm2030_vm3, %v2026_v61 }
 0x304   : > { %v1996_v51 = vpop.permute.xlu1 %1995 }
 0x305   : > { %v2013_v1 = vmul.f32 %v1996_v51, %v1917_v37  ;;  %v2137_v38 = vpop.permute.xlu0 %2136  ;;  %v2081_v17 = vpop.permute.xlu2 %2080 }
 0x306   : > { %v2119_v12 = vsub.f32 %v4305_v32, %v2081_v17 }
 0x307   : > { %v2029_v33 = vpack.c.bf16 %v2013_v1, %v2013_v1 }
 0x309   : > { %2046 = vst.msk [vmem:[#allocation2 + $0x78] sm:$0xf] %vm2030_vm3, %v2029_v33 }
 0x30d   : > { %v2149_v26 = vpop.permute.xlu0 %2148  ;;  %v2093_v54 = vpop.permute.xlu2 %2092 }
 0x30e   : > { %v2196_v6 = vmul.f32 %v2149_v26, %v2116_v30  ;;  %v2057_v22 = vpop.permute.xlu1 %2056  ;;  %v2122_v59 = vsub.f32 %v3438_v63, %v2093_v54 }
 0x30f   : > { %v2113_v8 = vsub.f32 %v4329_v15, %v2057_v22 }
 0x310   : > { %v2212_v55 = vpack.c.bf16 %v2196_v6, %v2196_v6  ;;  %v2117_v6 = vsub.f32 %v3420_v25, %v3995_v27  ;;  %v2126_v25 = vsub.f32 %v4311_v52, %v4016_v11 }
 0x311   : > { %v2193_v41 = vmul.f32 %v2137_v38, %v2113_v8 }
 0x312   : > { %2228 = vst.msk [vmem:[#allocation2 + $0x2c] sm:$0xf] %vm2030_vm3, %v2212_v55 }
 0x313   : > { %v2209_v14 = vpack.c.bf16 %v2193_v41, %v2193_v41  ;;  %v2123_v41 = vsub.f32 %v3457_v49, %v4009_v50 }
 0x315   : > { %2225 = vst.msk [vmem:[#allocation2 + $0x14] sm:$0xf] %vm2030_vm3, %v2209_v14  ;;  %v2161_v29 = vpop.permute.xlu0 %2160  ;;  %v2105_v23 = vpop.permute.xlu2 %2104 }
 0x316   : > { %v2199_v7 = vmul.f32 %v2161_v29, %v2119_v12  ;;  %v2065_v62 = vpop.permute.xlu1 %2064  ;;  %v2125_v5 = vsub.f32 %v3455_v48, %v2105_v23 }
 0x317   : > { %v2115_v20 = vsub.f32 %v4306_v42, %v2065_v62  ;;  %v2111_v42 = vsub.f32 %v4309_v43, %v4004_v16 }
 0x318   : > { %v2215_v2 = vpack.c.bf16 %v2199_v7, %v2199_v7 }
 0x31a   : > { %2231 = vst.msk [vmem:[#allocation2 + $0x44] sm:$0xf] %vm2030_vm3, %v2215_v2 }
 0x31d   : > { %v2173_v13 = vpop.permute.xlu0 %2172  ;;  %v2133_v9 = vpop.permute.xlu2 %2132 }
 0x31e   : > { %v2202_v53 = vmul.f32 %v2173_v13, %v2122_v59  ;;  %v2192_v57 = vmul.f32 %v2133_v9, %v2112_v34  ;;  %v2077_v0 = vpop.permute.xlu1 %2076 }
 0x31f   : > { %v2118_v47 = vsub.f32 %v4307_v28, %v2077_v0 }
 0x320   : > { %v2218_v32 = vpack.c.bf16 %v2202_v53, %v2202_v53  ;;  %v2208_v24 = vpack.c.bf16 %v2192_v57, %v2192_v57 }
 0x322   : > { %2234 = vst.msk [vmem:[#allocation2 + $0x5c] sm:$0xf] %vm2030_vm3, %v2218_v32 }
 0x323   : > { %2224 = vst.msk [vmem:[#allocation2 + $0xc] sm:$0xf] %vm2030_vm3, %v2208_v24 }
 0x325   : > { %v2185_v35 = vpop.permute.xlu0 %2184  ;;  %v2145_v4 = vpop.permute.xlu2 %2144 }
 0x326   : > { %v2205_v21 = vmul.f32 %v2185_v35, %v2125_v5  ;;  %v2195_v56 = vmul.f32 %v2145_v4, %v2115_v20  ;;  %v2089_v63 = vpop.permute.xlu1 %2088 }
 0x327   : > { %v2121_v48 = vsub.f32 %v4308_v39, %v2089_v63 }
 0x328   : > { %v2221_v10 = vpack.c.bf16 %v2205_v21, %v2205_v21  ;;  %v2211_v19 = vpack.c.bf16 %v2195_v56, %v2195_v56 }
 0x32a   : > { %2237 = vst.msk [vmem:[#allocation2 + $0x74] sm:$0xf] %vm2030_vm3, %v2221_v10 }
 0x32b   : > { %2227 = vst.msk [vmem:[#allocation2 + $0x24] sm:$0xf] %vm2030_vm3, %v2211_v19 }
 0x32d   : > { %v2157_v18 = vpop.permute.xlu2 %2156 }
 0x32e   : > { %v2198_v45 = vmul.f32 %v2157_v18, %v2118_v47  ;;  %v2101_v61 = vpop.permute.xlu1 %2100 }
 0x32f   : > { %v2124_v28 = vsub.f32 %v3405_v60, %v2101_v61 }
 0x330   : > { %v2214_v46 = vpack.c.bf16 %v2198_v45, %v2198_v45 }
 0x332   : > { %2230 = vst.msk [vmem:[#allocation2 + $0x3c] sm:$0xf] %vm2030_vm3, %v2214_v46 }
 0x335   : > { %v2169_v37 = vpop.permute.xlu2 %2168 }
 0x336   : > { %v2201_v51 = vmul.f32 %v2169_v37, %v2121_v48  ;;  %v2129_v1 = vpop.permute.xlu1 %2128 }
 0x337   : > { %v2191_v38 = vmul.f32 %v2129_v1, %v2111_v42 }
 0x338   : > { %v2217_v17 = vpack.c.bf16 %v2201_v51, %v2201_v51 }
 0x339   : > { %v2207_v33 = vpack.c.bf16 %v2191_v38, %v2191_v38 }
 0x33a   : > { %2233 = vst.msk [vmem:[#allocation2 + $0x54] sm:$0xf] %vm2030_vm3, %v2217_v17 }
 0x33b   : > { %2223 = vst.msk [vmem:[#allocation2 + $0x4] sm:$0xf] %vm2030_vm3, %v2207_v33 }
 0x33d   : > { %v2181_v30 = vpop.permute.xlu2 %2180 }
 0x33e   : > { %v2204_v39 = vmul.f32 %v2181_v30, %v2124_v28  ;;  %v2141_v26 = vpop.permute.xlu1 %2140 }
 0x33f   : > { %v2194_v54 = vmul.f32 %v2141_v26, %v2114_v44 }
 0x340   : > { %v2220_v43 = vpack.c.bf16 %v2204_v39, %v2204_v39 }
 0x341   : > { %v2210_v16 = vpack.c.bf16 %v2194_v54, %v2194_v54 }
 0x342   : > { %2236 = vst.msk [vmem:[#allocation2 + $0x6c] sm:$0xf] %vm2030_vm3, %v2220_v43 }
 0x343   : > { %2226 = vst.msk [vmem:[#allocation2 + $0x1c] sm:$0xf] %vm2030_vm3, %v2210_v16 }
 0x346   : > { %v2153_v22 = vpop.permute.xlu1 %2152 }
 0x347   : > { %v2197_v15 = vmul.f32 %v2153_v22, %v2117_v6 }
 0x349   : > { %v2213_v8 = vpack.c.bf16 %v2197_v15, %v2197_v15 }
 0x34b   : > { %2229 = vst.msk [vmem:[#allocation2 + $0x34] sm:$0xf] %vm2030_vm3, %v2213_v8 }
 0x34e   : > { %v2165_v60 = vpop.permute.xlu1 %2164 }
 0x34f   : > { %v2200_v36 = vmul.f32 %v2165_v60, %v2120_v3 }
 0x351   : > { %v2216_v55 = vpack.c.bf16 %v2200_v36, %v2200_v36 }
 0x353   : > { %2232 = vst.msk [vmem:[#allocation2 + $0x4c] sm:$0xf] %vm2030_vm3, %v2216_v55 }
 0x356   : > { %v2177_v14 = vpop.permute.xlu1 %2176 }
 0x357   : > { %v2203_v12 = vmul.f32 %v2177_v14, %v2123_v41 }
 0x359   : > { %v2219_v29 = vpack.c.bf16 %v2203_v12, %v2203_v12 }
 0x35b   : > { %2235 = vst.msk [vmem:[#allocation2 + $0x64] sm:$0xf] %vm2030_vm3, %v2219_v29 }
 0x35e   : > { %v2189_v27 = vpop.permute.xlu1 %2188 }
 0x35f   : > { %v2206_v23 = vmul.f32 %v2189_v27, %v2126_v25 }
 0x361   : > { %v2222_v7 = vpack.c.bf16 %v2206_v23, %v2206_v23 }
 0x363   : > { %2238 = vst.msk [vmem:[#allocation2 + $0x7c] sm:$0xf] %vm2030_vm3, %v2222_v7 }
 0x364 PF: > { %v2601_v40 = vld [vmem:[#allocation2 + $0x70] sm:$0xf]  ;;  %v2631_v31 = vld [vmem:[#allocation2 + $0x74] sm:$0xf0]  ;;  %v2630_v62 = vld [vmem:[#allocation2 + $0x74] sm:$0xf] }
 0x365   : > { %v2602_v2 = vor.u32 %v2631_v31, %v2601_v40  ;;  %v2593_v50 = vld [vmem:[#allocation2 + $0x60] sm:$0xf]  ;;  %v2629_v34 = vld [vmem:[#allocation2 + $0x64] sm:$0xf0]  ;;  %v2628_v59 = vld [vmem:[#allocation2 + $0x64] sm:$0xf] }
 0x366   : > { %v2595_v13 = vld [vmem:[#allocation2 + $0x68] sm:$0xf0]  ;;  %v2594_v9 = vor.u32 %v2629_v34, %v2593_v50  ;;  %v2585_v11 = vld [vmem:[#allocation2 + $0x50] sm:$0xf]  ;;  %v2627_v53 = vld [vmem:[#allocation2 + $0x54] sm:$0xf0] }
 0x367   : > { %2351 = vmatpush.bf16.xpose.msra.mxu0 %v2602_v2  ;;  %v2598_v52 = vor.u32 %v2628_v59, %v2595_v13  ;;  %v2626_v57 = vld [vmem:[#allocation2 + $0x54] sm:$0xf]  ;;  %v2587_v0 = vld [vmem:[#allocation2 + $0x58] sm:$0xf0]  ;;  %v2586_v32 = vor.u32 %v2627_v53, %v2585_v11  ;;  %v2577_v5 = vld [vmem:[#allocation2 + $0x40] sm:$0xf] }
 0x368   : > { %v2590_v24 = vor.u32 %v2626_v57, %v2587_v0  ;;  %v2625_v20 = vld [vmem:[#allocation2 + $0x44] sm:$0xf0]  ;;  %v2624_v35 = vld [vmem:[#allocation2 + $0x44] sm:$0xf]  ;;  %v2579_v4 = vld [vmem:[#allocation2 + $0x48] sm:$0xf0] }
 0x369   : > { %v2578_v21 = vor.u32 %v2625_v20, %v2577_v5  ;;  %v2582_v56 = vor.u32 %v2624_v35, %v2579_v4  ;;  %v2569_v63 = vld [vmem:[#allocation2 + $0x30] sm:$0xf]  ;;  %v2623_v10 = vld [vmem:[#allocation2 + $0x34] sm:$0xf0]  ;;  %v2622_v19 = vld [vmem:[#allocation2 + $0x34] sm:$0xf] }
 0x36a   : > { %v2603_v58 = vld [vmem:[#allocation2 + $0x78] sm:$0xf0]  ;;  %v2570_v18 = vor.u32 %v2623_v10, %v2569_v63  ;;  %v2561_v61 = vld [vmem:[#allocation2 + $0x20] sm:$0xf]  ;;  %v2621_v46 = vld [vmem:[#allocation2 + $0x24] sm:$0xf0] }
 0x36b   : > { %v2606_v49 = vor.u32 %v2630_v62, %v2603_v58  ;;  %v2571_v47 = vld [vmem:[#allocation2 + $0x38] sm:$0xf0]  ;;  %v2620_v48 = vld [vmem:[#allocation2 + $0x24] sm:$0xf]  ;;  %v2563_v42 = vld [vmem:[#allocation2 + $0x28] sm:$0xf0]  ;;  %v2562_v37 = vor.u32 %v2621_v46, %v2561_v61 }
 0x36c   : > { %v2574_v45 = vor.u32 %v2622_v19, %v2571_v47  ;;  %v2566_v51 = vor.u32 %v2620_v48, %v2563_v42  ;;  %v2553_v1 = vld [vmem:[#allocation2 + $0x10] sm:$0xf]  ;;  %v2619_v38 = vld [vmem:[#allocation2 + $0x14] sm:$0xf0]  ;;  %v2618_v17 = vld [vmem:[#allocation2 + $0x14] sm:$0xf] }
 0x36d   : > { %2365 = vmatpush.bf16.xpose.msra.mxu1 %v2606_v49  ;;  %v2555_v33 = vld [vmem:[#allocation2 + $0x18] sm:$0xf0]  ;;  %v2554_v28 = vor.u32 %v2619_v38, %v2553_v1  ;;  %v2545_v30 = vld [vmem:[#allocation2] sm:$0xf]  ;;  %v2617_v39 = vld [vmem:[#allocation2 + $0x4] sm:$0xf0] }
 0x36e   : > { %v2558_v44 = vor.u32 %v2618_v17, %v2555_v33  ;;  %v2616_v26 = vld [vmem:[#allocation2 + $0x4] sm:$0xf]  ;;  %v2547_v54 = vld [vmem:[#allocation2 + $0x8] sm:$0xf0]  ;;  %v2546_v43 = vor.u32 %v2617_v39, %v2545_v30  ;;  %v2537_v6 = vld [vmem:[%s2957_s30] sm:$0xf] }
 0x36f   : > { %2352 = vmatpush.bf16.xpose.msra.mxu0 %v2594_v9  ;;  %v2550_v16 = vor.u32 %v2616_v26, %v2547_v54  ;;  %v2615_v22 = vld [vmem:[%s2957_s30 + $0x4] sm:$0xf0]  ;;  %v2614_v15 = vld [vmem:[%s2957_s30 + $0x4] sm:$0xf]  ;;  %v2539_v8 = vld [vmem:[%s2957_s30 + $0x8] sm:$0xf0] }
 0x370   : > { %v2538_v3 = vor.u32 %v2615_v22, %v2537_v6  ;;  %v2542_v60 = vor.u32 %v2614_v15, %v2539_v8  ;;  %s2632_s23 = sshll.u32 %s2818_s21, 2  ;;  %v2739_v36 = vld [vmem:[%s321_s9] ss:$0 sm:$0xff]  ;;  %s2396_s21 = sshll.u32 %s2982_s8, 4  ;;  %s2397_s21 = int_to_ptr.vmem [resolvable:$true] %s2396_s21 }
 0x371   : > { %s2393_s29 = sadd.s32 %s2822_s22, %s2632_s23  ;;  %s4331_s22 = sand.u32 1, %s2810_s19  }
 0x372   : > { %s2610_s11 = sshll.u32 %s2393_s29, 3  ;;  %s2382_s10 = scalar_lea.sflag [#allocation4], %s4331_s22 }
 0x373   : > { %s2395_s16 = scalar_lea.hbm %s4123_s5, %s2610_s11  ;;  %s2760_s27 = scalar_lea.hbm %s4123_s5, 64 }
 0x374   : > { %s2398_s30 = sshll.u32 %s2395_s16, 4  ;;  %s2399_s30 = int_to_ptr.hbm [resolvable:$true] %s2398_s30 }
 0x375   : > { %2366 = vmatpush.bf16.xpose.msra.mxu1 %v2598_v52  ;;  %s2754_s13 = sshra.s32 %s2399_s30, 4  ;;  %s2755_s13 = int_to_ptr.hbm [resolvable:$true] %s2754_s13 }
 0x376   : > { %s2756_s17 = scalar_lea.hbm %s2755_s13, 16  ;;  %p2761_p7 = scmp.lt.s32.totalorder %s2755_s13, %s4123_s5 }
 0x377   : > { %2353 = vmatpush.bf16.xpose.msra.mxu0 %v2586_v32  ;;  %p2757_p4 = scmp.ne.s32.totalorder %s2755_s13, %s2756_s17  ;;  %p2762_p9 = scmp.lt.s32.totalorder %s2760_s27, %s2756_s17 }
 0x379   : > { %p2758_p5 = pnand %p2757_p4, %p2928_p3  ;;  %p2763_p10 = por %p2762_p9, %p2761_p7 }
 0x37b   : > { %p2759_p6 = pneg %p2758_p5 }
 0x37d   : > { %2367 = vmatpush.bf16.xpose.msra.mxu1 %v2590_v24  ;;  %p2764_p11 = pnand %p2763_p10, %p2759_p6 }
 0x37f   : > { %2354 = vmatpush.bf16.xpose.msra.mxu0 %v2578_v21 }
 0x385   : > { %2368 = vmatpush.bf16.xpose.msra.mxu1 %v2582_v56 }
 0x387   : > { %2355 = vmatpush.bf16.xpose.msra.mxu0 %v2570_v18 }
 0x38d   : > { %2369 = vmatpush.bf16.xpose.msra.mxu1 %v2574_v45 }
 0x38f   : > { %2356 = vmatpush.bf16.xpose.msra.mxu0 %v2562_v37 }
 0x395   : > { %2370 = vmatpush.bf16.xpose.msra.mxu1 %v2566_v51 }
 0x397   : > { %2357 = vmatpush.bf16.xpose.msra.mxu0 %v2554_v28 }
 0x39d   : > { %2371 = vmatpush.bf16.xpose.msra.mxu1 %v2558_v44 }
 0x39f   : > { %2358 = vmatpush.bf16.xpose.msra.mxu0 %v2546_v43 }
 0x3a5   : > { %2372 = vmatpush.bf16.xpose.msra.mxu1 %v2550_v16 }
 0x3a6   : > { %2359 = vmatmul.bf16.vlgmr.msra.gmra.mxu0 %v2538_v3 }
 0x3ac   : > { %2373 = vmatmul.bf16.vlgmr.msra.gmra.mxu1 %v2542_v60 }
 0x423   : > { %v2360_v55 = vpop.f32.mrf.mxu0 }
 0x424   : > { %v2361_v41 = vadd.f32 %v2739_v36, %v2360_v55 }
 0x429   : > { %v2374_v14 = vpop.f32.mrf.mxu1 }
 0x42a   : > { %v2375_v12 = vadd.f32 %v2374_v14, %v2361_v41 }
 0x42b   : > { %v2362_v29 = vpop.f32.mrf.mxu0 }
 0x42c   : > { %2379 = vst [vmem:[%s2982_s8] sm:$0xff] %v2375_v12  ;;  %v2363_v25 = vadd.f32 %v2739_v36, %v2362_v29 }
 0x431   : > { %v2376_v27 = vpop.f32.mrf.mxu1 }
 0x432   : > { %v2377_v23 = vadd.f32 %v2376_v27, %v2363_v25 }
 0x434   : > { %2380 = vst [vmem:[%s2982_s8 + $0x8] sm:$0xff] %v2377_v23 }
 0x435   : > { %2767 = shalt.err (!%p2764_p11)
}
 0x436   : > { %s2844_s8 = smov 128   ;;  %s2845_s24 = smov 256  }
 0x437   : > { %s2846_s28 = smov 8  }
 0x438   : > { %2633 = dma.vmem_to_hbm [thread:$0]  (%p2928_p3), %s2397_s21, 256, %s2399_s30, %s2382_s10, %s2844_s8, %s2845_s24, %s2846_s28  }
 0x439 PF: > { %p2639_p12 = scmp.ge.s32.totalorder %s2834_s25, 2  ;;  %s2413_s29 = sand.u32 1, %s2806_s18  }
 0x43a   : > { %s2414_s11 = scalar_lea.sflag [#allocation4], %s2413_s29 }
 0x43b   : > { %p2636_p13 = pnand %p2639_p12, %p2937_p8 }
 0x43d   : > { %p2637_p0 = pneg %p2636_p13 }
 0x43f   : > { %2801 = dma.done.wait (%p2637_p0), %s2414_s11, 256  }
 0x440   : > { %2803 = vsyncadd (%p2637_p0), %s2414_s11, 4294967040  ;;  %s18_s25 = sadd.s32 1, %s2834_s25   ;;  %s4332_s12 = sld [smem:[#allocation10_spill]] }
 0x441   : > { %p15_p1 = scmp.ge.s32.totalorder %s18_s25, 6   ;;  %s4333_s21 = sld [smem:[#allocation6_spill]] }
 0x442   : > { %s4334_s22 = sld [smem:[#allocation7_spill]]  ;;  %s4337_s18 = smov %s2810_s19 }
 0x443   : > { %s4335_s23 = sld [smem:[#allocation8_spill]]  ;;  %s4338_s19 = smov %s2814_s20 }
 0x444   : > { %s4336_s24 = sld [smem:[#allocation9_spill]]  ;;  %17 = sbr.rel (!%p15_p1) target bundleno = 5 (0x5), region = 91 }
 0x446   : > { %s4339_s20 = smov %s4332_s12 }
 0x449   :  { %2420 = vsyncpa [#allocation4], 1 }
 0x44a   :  { %2422 = vsyncpa [#allocation4 + $0x1], 1 }

</bundles_post_ra>
